<compile_context>
chip_gen: v7x
topology: tpu7x:2x2x1
jax: 0.10.0
libtpu: 0.0.40
codegen_flags: <defaults>
</compile_context>

<pallas_src>
import math

import jax
import jax.numpy as jnp
import numpy as np
from jax import lax
from jax.experimental import pallas as pl
from jax.experimental.pallas import tpu as pltpu

EPS = 1e-5
BF16 = jnp.bfloat16
F32 = jnp.float32
_VMEM_LIMIT = 64 * 1024 * 1024  # safe on v5e/v6e (128 MiB) and v7x (64 MiB)


def _layernorm(x, g, b):
    mu = jnp.mean(x, axis=-1, keepdims=True)
    var = jnp.mean(jnp.square(x - mu), axis=-1, keepdims=True)
    return (x - mu) * lax.rsqrt(var + EPS) * g + b


def _gelu_exact(x):
    # F.gelu default (erf form).  TODO(synk): tanh-approx (EUP) is cheaper on
    # v5e; exact form kept for parity with the PyTorch module.
    return 0.5 * x * (1.0 + lax.erf(x * (1.0 / math.sqrt(2.0))))


def _proj_heads(a, w):
    """(n, c) f32 x (H, c, D) bf16 -> (H, n, D) f32.

    Only ever applied to the tq-row QUERY tile (all K/V projections are
    hoisted to the per-batch prologue), so the small head broadcast is cheap
    and happens once per query tile."""
    heads = w.shape[0]
    ab = jnp.broadcast_to(a.astype(BF16)[None], (heads,) + a.shape)
    return lax.dot_general(ab, w, (((2,), (1,)), ((0,), (0,))),
                           preferred_element_type=F32)


def _out_proj_heads(o, wo, bo):
    """Head-accumulated output projection: (H, tq, D) f32 -> (tq, C) f32.

    Accumulates each head's (tq, D) @ (D, C) contribution into a single f32
    buffer instead of materializing an (H, tq, C) intermediate + head sum."""
    heads = wo.shape[0]
    acc = jnp.dot(o[0].astype(BF16), wo[0], preferred_element_type=F32)
    for h in range(1, heads):          # static unroll; H is small
        acc = acc + jnp.dot(o[h].astype(BF16), wo[h],
                            preferred_element_type=F32)
    return acc + bo


def _cross_attend(q, k, v):
    """q (H,tq,D) f32, k/v (H,M,D) bf16 -> (H,tq,D) f32 (M is small)."""
    sim = lax.dot_general(q.astype(BF16), k, (((2,), (2,)), ((0,), (0,))),
                          preferred_element_type=F32)
    sim = sim - jnp.max(sim, axis=-1, keepdims=True)
    p = jnp.exp(sim)
    p = p * pl.reciprocal(jnp.sum(p, axis=-1, keepdims=True), approx=True)
    return lax.dot_general(p.astype(BF16), v, (((2,), (1,)), ((0,), (0,))),
                           preferred_element_type=F32)


# ---------------------------------------------------------------------------
# Prologue kernel: per-batch K/V for self- and cross-attention.
# grid = (B, H); LN1(x_full) is computed once per batch (h == 0) into scratch.
# ---------------------------------------------------------------------------
def kv_prologue_kernel(x_ref, ctx_ref, ln1_g_ref, ln1_b_ref,
                       wk1_ref, wv1_ref, wk2_ref, wv2_ref,
                       k1_ref, v1_ref, k2_ref, v2_ref, xn_scr):
    @pl.when(pl.program_id(1) == 0)
    def _():
        xn_scr[...] = _layernorm(x_ref[...], ln1_g_ref[...],
                                 ln1_b_ref[...]).astype(BF16)

    xn1 = xn_scr[...]                      # (N, C) bf16, shared by all heads
    ctx = ctx_ref[...].astype(BF16)        # (M, Cc)

    k1_ref[...] = jnp.dot(xn1, wk1_ref[...],
                          preferred_element_type=F32).astype(BF16)
    v1_ref[...] = jnp.dot(xn1, wv1_ref[...],
                          preferred_element_type=F32).astype(BF16)
    k2_ref[...] = jnp.dot(ctx, wk2_ref[...],
                          preferred_element_type=F32).astype(BF16)
    v2_ref[...] = jnp.dot(ctx, wv2_ref[...],
                          preferred_element_type=F32).astype(BF16)


# ---------------------------------------------------------------------------
# Main kernel: online-softmax self-attention over KV tiles, then cross-attn
# + GEGLU FF on the last KV step.  grid = (B, N//tq, N//tkv).
# ---------------------------------------------------------------------------
def block_kernel(x_ref, k1_ref, v1_ref, k2_ref, v2_ref,
                 ln1_g_ref, ln1_b_ref, wq1_ref, wo1_ref, bo1_ref,
                 ln2_g_ref, ln2_b_ref, wq2_ref, wo2_ref, bo2_ref,
                 ln3_g_ref, ln3_b_ref,
                 w1a_ref, b1a_ref, w1b_ref, b1b_ref, w2_ref, b2_ref,
                 out_ref,
                 q_scr, m_scr, l_scr, acc_scr):
    kv = pl.program_id(2)
    last_kv = pl.num_programs(2) - 1

    # ---- once per query tile: Q projection + running-stat init -------------
    @pl.when(kv == 0)
    def _():
        xn1 = _layernorm(x_ref[...], ln1_g_ref[...], ln1_b_ref[...])
        q_scr[...] = _proj_heads(xn1, wq1_ref[...]).astype(BF16)   # (H,tq,D)
        m_scr[...] = jnp.full(m_scr.shape, -jnp.inf, dtype=F32)
        l_scr[...] = jnp.zeros(l_scr.shape, dtype=F32)
        acc_scr[...] = jnp.zeros(acc_scr.shape, dtype=F32)

    # ---- attn1: online-softmax step over this KV tile -----------------------
    sim = lax.dot_general(q_scr[...], k1_ref[...],
                          (((2,), (2,)), ((0,), (0,))),
                          preferred_element_type=F32)              # (H,tq,tkv)
    m_new = jnp.maximum(m_scr[...], jnp.max(sim, axis=-1, keepdims=True))
    alpha = jnp.exp(m_scr[...] - m_new)
    p = jnp.exp(sim - m_new)
    l_scr[...] = alpha * l_scr[...] + jnp.sum(p, axis=-1, keepdims=True)
    acc_scr[...] = alpha * acc_scr[...] + lax.dot_general(
        p.astype(BF16), v1_ref[...], (((2,), (1,)), ((0,), (0,))),
        preferred_element_type=F32)
    m_scr[...] = m_new

    # ---- last KV step: finalize attn1, then attn2 + GEGLU FF ---------------
    @pl.when(kv == last_kv)
    def _():
        x = x_ref[...]                                             # (tq, C)
        o1 = acc_scr[...] * pl.reciprocal(l_scr[...], approx=True)
        x = x + _out_proj_heads(o1, wo1_ref[...], bo1_ref[...])

        # cross-attention (context length M is small; single-pass softmax)
        xn2 = _layernorm(x, ln2_g_ref[...], ln2_b_ref[...])
        q2 = _proj_heads(xn2, wq2_ref[...])
        o2 = _cross_attend(q2, k2_ref[...], v2_ref[...])
        x = x + _out_proj_heads(o2, wo2_ref[...], bo2_ref[...])

        # GEGLU feed-forward (value/gate weights pre-split host-side)
        xn3 = _layernorm(x, ln3_g_ref[...], ln3_b_ref[...]).astype(BF16)
        val = jnp.dot(xn3, w1a_ref[...],
                      preferred_element_type=F32) + b1a_ref[...]
        gate = jnp.dot(xn3, w1b_ref[...],
                       preferred_element_type=F32) + b1b_ref[...]
        hidden = (val * _gelu_exact(gate)).astype(BF16)
        ff = jnp.dot(hidden, w2_ref[...],
                     preferred_element_type=F32) + b2_ref[...]

        # TODO(synk): if production C is not a multiple of 128, pad channels
        #             host-side to keep stores lane-dense on v5e.
        out_ref[...] = x + ff


# ---------------------------------------------------------------------------
# Host-side weight preparation (one-time): head layout + bf16 cast.
# ---------------------------------------------------------------------------
def prepare_params(raw, *, heads, dim_head):
    scale = dim_head ** (-0.5)

    def head_in(wt):   # torch (inner, c_in) -> (H, c_in, D)
        c_in = wt.shape[1]
        return jnp.transpose(wt.reshape(heads, dim_head, c_in), (0, 2, 1))

    def head_out(wt):  # torch (c_out, inner) -> (H, D, c_out)
        c_out = wt.shape[0]
        return wt.T.reshape(heads, dim_head, c_out)

    ffi = raw["ff_w2"].shape[1]
    w1t = raw["ff_w1"].T          # (dim, 2*ffi): [:, :ffi]=value, [:, ffi:]=gate

    return {
        "ln1_g": raw["ln1_g"], "ln1_b": raw["ln1_b"],
        "ln2_g": raw["ln2_g"], "ln2_b": raw["ln2_b"],
        "ln3_g": raw["ln3_g"], "ln3_b": raw["ln3_b"],
        "a1_wq": (head_in(raw["a1_wq"]) * scale).astype(BF16),
        "a1_wk": head_in(raw["a1_wk"]).astype(BF16),
        "a1_wv": head_in(raw["a1_wv"]).astype(BF16),
        "a1_wo": head_out(raw["a1_wo"]).astype(BF16),
        "a1_bo": raw["a1_bo"],
        "a2_wq": (head_in(raw["a2_wq"]) * scale).astype(BF16),
        "a2_wk": head_in(raw["a2_wk"]).astype(BF16),
        "a2_wv": head_in(raw["a2_wv"]).astype(BF16),
        "a2_wo": head_out(raw["a2_wo"]).astype(BF16),
        "a2_bo": raw["a2_bo"],
        "ff_w1a": w1t[:, :ffi].astype(BF16), "ff_b1a": raw["ff_b1"][:, :ffi],
        "ff_w1b": w1t[:, ffi:].astype(BF16), "ff_b1b": raw["ff_b1"][:, ffi:],
        "ff_w2": raw["ff_w2"].T.astype(BF16), "ff_b2": raw["ff_b2"],
    }


# ---------------------------------------------------------------------------
# Wrapper
# ---------------------------------------------------------------------------
def basic_transformer_block(x, context, params, *, block_q=128, block_kv=512):
    B, N, C = x.shape
    M, Cc = context.shape[1], context.shape[2]
    p = params
    H, _, D = p["a1_wk"].shape
    tq = min(block_q, N)
    tkv = min(block_kv, N)
    assert N % tq == 0, f"N={N} must be divisible by query tile {tq}"
    assert N % tkv == 0, f"N={N} must be divisible by KV tile {tkv}"

    def run(single_buffer_weights):
        def const_spec(shape, idx):
            # Constant/per-batch blocks: double-buffering buys nothing but
            # doubles VMEM, so request a single buffer.
            if single_buffer_weights:
                return pl.BlockSpec(shape, idx, pipeline_mode=pl.Buffered(1))
            return pl.BlockSpec(shape, idx)

        # ---- prologue: per-batch K/V (self + cross) -------------------------
        k1, v1, k2, v2 = pl.pallas_call(
            kv_prologue_kernel,
            out_shape=(
                jax.ShapeDtypeStruct((B, H, N, D), BF16),
                jax.ShapeDtypeStruct((B, H, N, D), BF16),
                jax.ShapeDtypeStruct((B, H, M, D), BF16),
                jax.ShapeDtypeStruct((B, H, M, D), BF16),
            ),
            grid=(B, H),
            in_specs=[
                pl.BlockSpec((None, N, C), lambda b, h: (b, 0, 0)),
                pl.BlockSpec((None, M, Cc), lambda b, h: (b, 0, 0)),
                const_spec(p["ln1_g"].shape, lambda b, h: (0, 0)),
                const_spec(p["ln1_b"].shape, lambda b, h: (0, 0)),
                pl.BlockSpec((None, C, D), lambda b, h: (h, 0, 0)),
                pl.BlockSpec((None, C, D), lambda b, h: (h, 0, 0)),
                pl.BlockSpec((None, Cc, D), lambda b, h: (h, 0, 0)),
                pl.BlockSpec((None, Cc, D), lambda b, h: (h, 0, 0)),
            ],
            out_specs=(
                pl.BlockSpec((None, None, N, D), lambda b, h: (b, h, 0, 0)),
                pl.BlockSpec((None, None, N, D), lambda b, h: (b, h, 0, 0)),
                pl.BlockSpec((None, None, M, D), lambda b, h: (b, h, 0, 0)),
                pl.BlockSpec((None, None, M, D), lambda b, h: (b, h, 0, 0)),
            ),
            scratch_shapes=[pltpu.VMEM((N, C), BF16)],   # LN1(x) cache
            compiler_params=pltpu.CompilerParams(
                dimension_semantics=("parallel", "arbitrary"),
                vmem_limit_bytes=_VMEM_LIMIT),
        )(x, context, p["ln1_g"], p["ln1_b"],
          p["a1_wk"], p["a1_wv"], p["a2_wk"], p["a2_wv"])

        # ---- main fused block kernel ----------------------------------------
        weights = (
            p["ln1_g"], p["ln1_b"], p["a1_wq"], p["a1_wo"], p["a1_bo"],
            p["ln2_g"], p["ln2_b"], p["a2_wq"], p["a2_wo"], p["a2_bo"],
            p["ln3_g"], p["ln3_b"],
            p["ff_w1a"], p["ff_b1a"], p["ff_w1b"], p["ff_b1b"],
            p["ff_w2"], p["ff_b2"],
        )

        def wspec(wt):
            nd = wt.ndim
            return const_spec(wt.shape, lambda b, i, k: (0,) * nd)

        in_specs = [
            pl.BlockSpec((None, tq, C), lambda b, i, k: (b, i, 0)),      # x tile
            pl.BlockSpec((None, H, tkv, D), lambda b, i, k: (b, 0, k, 0)),  # K1
            pl.BlockSpec((None, H, tkv, D), lambda b, i, k: (b, 0, k, 0)),  # V1
            pl.BlockSpec((None, H, M, D), lambda b, i, k: (b, 0, 0, 0)),    # K2
            pl.BlockSpec((None, H, M, D), lambda b, i, k: (b, 0, 0, 0)),    # V2
        ] + [wspec(wt) for wt in weights]

        return pl.pallas_call(
            block_kernel,
            out_shape=jax.ShapeDtypeStruct((B, N, C), jnp.float32),
            grid=(B, N // tq, N // tkv),
            in_specs=in_specs,
            out_specs=pl.BlockSpec((None, tq, C), lambda b, i, k: (b, i, 0)),
            scratch_shapes=[
                pltpu.VMEM((H, tq, D), BF16),   # cached Q for attn1
                pltpu.VMEM((H, tq, 1), F32),    # running max
                pltpu.VMEM((H, tq, 1), F32),    # running denom
                pltpu.VMEM((H, tq, D), F32),    # running numerator
            ],
            compiler_params=pltpu.CompilerParams(
                dimension_semantics=("parallel", "parallel", "arbitrary"),
                vmem_limit_bytes=_VMEM_LIMIT),
        )(x, k1, v1, k2, v2, *weights)

    try:
        return run(True)
    except Exception:
        # Fallback if pl.Buffered(1) single-buffering hint is unsupported in
        # this JAX build; everything else is identical.
        return run(False)


# ---------------------------------------------------------------------------
# Pure-JAX references
# ---------------------------------------------------------------------------
def _ln_ref(t, g, b):
    mu = t.mean(-1, keepdims=True)
    var = ((t - mu) ** 2).mean(-1, keepdims=True)
    return (t - mu) / jnp.sqrt(var + EPS) * g + b


def ref_block_prepared(x, context, p):
    """Mirrors the kernel's bf16 cast points on the prepared params."""
    def mha(xn_q, kv, wq, wk, wv, wo, bo):
        q = jnp.einsum("bnc,hcd->bhnd", xn_q.astype(BF16), wq,
                       preferred_element_type=F32)
        k = jnp.einsum("bmc,hcd->bhmd", kv.astype(BF16), wk,
                       preferred_element_type=F32)
        v = jnp.einsum("bmc,hcd->bhmd", kv.astype(BF16), wv,
                       preferred_element_type=F32)
        sim = jnp.einsum("bhnd,bhmd->bhnm", q.astype(BF16), k.astype(BF16),
                         preferred_element_type=F32)
        pr = jax.nn.softmax(sim, axis=-1)
        o = jnp.einsum("bhnm,bhmd->bhnd", pr.astype(BF16), v.astype(BF16),
                       preferred_element_type=F32)
        out = jnp.einsum("bhnd,hdc->bnc", o.astype(BF16), wo,
                         preferred_element_type=F32)
        return out + bo

    xn1 = _ln_ref(x, p["ln1_g"], p["ln1_b"])
    x = x + mha(xn1, xn1, p["a1_wq"], p["a1_wk"], p["a1_wv"], p["a1_wo"], p["a1_bo"])
    xn2 = _ln_ref(x, p["ln2_g"], p["ln2_b"])
    x = x + mha(xn2, context, p["a2_wq"], p["a2_wk"], p["a2_wv"], p["a2_wo"], p["a2_bo"])
    xn3 = _ln_ref(x, p["ln3_g"], p["ln3_b"]).astype(BF16)
    val = jnp.einsum("bnc,cf->bnf", xn3, p["ff_w1a"],
                     preferred_element_type=F32) + p["ff_b1a"]
    gate = jnp.einsum("bnc,cf->bnf", xn3, p["ff_w1b"],
                      preferred_element_type=F32) + p["ff_b1b"]
    hidden = (val * _gelu_exact(gate)).astype(BF16)
    ff = jnp.einsum("bnf,fc->bnc", hidden, p["ff_w2"],
                    preferred_element_type=F32) + p["ff_b2"]
    return x + ff


def ref_block_f32(x, context, p, *, heads, dim_head):
    """Full-f32 semantic reference on torch-layout params."""
    def attn(xn, ctx, wq, wk, wv, wo, bo):
        q, k, v = xn @ wq.T, ctx @ wk.T, ctx @ wv.T
        B, N, _ = q.shape
        M = k.shape[1]
        q = q.reshape(B, N, heads, dim_head).transpose(0, 2, 1, 3)
        k = k.reshape(B, M, heads, dim_head).transpose(0, 2, 1, 3)
        v = v.reshape(B, M, heads, dim_head).transpose(0, 2, 1, 3)
        sim = jnp.einsum("bhnd,bhmd->bhnm", q, k) * dim_head ** (-0.5)
        pr = jax.nn.softmax(sim, axis=-1)
        o = jnp.einsum("bhnm,bhmd->bhnd", pr, v)
        o = o.transpose(0, 2, 1, 3).reshape(B, N, heads * dim_head)
        return o @ wo.T + bo.reshape(-1)

    xn1 = _ln_ref(x, p["ln1_g"], p["ln1_b"])
    x = x + attn(xn1, xn1, p["a1_wq"], p["a1_wk"], p["a1_wv"], p["a1_wo"], p["a1_bo"])
    xn2 = _ln_ref(x, p["ln2_g"], p["ln2_b"])
    x = x + attn(xn2, context, p["a2_wq"], p["a2_wk"], p["a2_wv"], p["a2_wo"], p["a2_bo"])
    xn3 = _ln_ref(x, p["ln3_g"], p["ln3_b"])
    h = xn3 @ p["ff_w1"].T + p["ff_b1"].reshape(-1)
    ffi = p["ff_w2"].shape[1]
    hidden = h[..., :ffi] * _gelu_exact(h[..., ffi:])
    return hidden @ p["ff_w2"].T + p["ff_b2"].reshape(-1) + x


# ---------------------------------------------------------------------------
if __name__ == "__main__":
    # Small shapes: dim=32, 4 heads x 8 dim_head, 16 query tokens, 8 ctx tokens
    B, N, M = 2, 16, 8
    dim, n_heads, d_head, context_dim = 32, 4, 8, 16
    inner = n_heads * d_head      # 32
    ff_inner = 4 * dim            # 128 (mult=4)

    key = jax.random.PRNGKey(0)
    ks = iter(jax.random.split(key, 32))
    w = lambda shape, s=0.05: (s * jax.random.normal(next(ks), shape)).astype(jnp.float32)

    # torch-layout parameters (Linear weight = (out_features, in_features))
    raw = {
        "ln1_g": 1.0 + w((1, dim), 0.1), "ln1_b": w((1, dim), 0.1),
        "ln2_g": 1.0 + w((1, dim), 0.1), "ln2_b": w((1, dim), 0.1),
        "ln3_g": 1.0 + w((1, dim), 0.1), "ln3_b": w((1, dim), 0.1),
        "a1_wq": w((inner, dim)), "a1_wk": w((inner, dim)),
        "a1_wv": w((inner, dim)), "a1_wo": w((dim, inner)), "a1_bo": w((1, dim)),
        "a2_wq": w((inner, dim)), "a2_wk": w((inner, context_dim)),
        "a2_wv": w((inner, context_dim)), "a2_wo": w((dim, inner)), "a2_bo": w((1, dim)),
        "ff_w1": w((2 * ff_inner, dim)), "ff_b1": w((1, 2 * ff_inner)),
        "ff_w2": w((dim, ff_inner)), "ff_b2": w((1, dim)),
    }

    x = jax.random.normal(next(ks), (B, N, dim), dtype=jnp.float32)
    context = jax.random.normal(next(ks), (B, M, context_dim), dtype=jnp.float32)

    prep = prepare_params(raw, heads=n_heads, dim_head=d_head)

    # block_q=8, block_kv=8 -> grid (2, 2, 2): exercises the multi-tile query
    # axis and the multi-step online-softmax KV axis.
    out = basic_transformer_block(x, context, prep, block_q=8, block_kv=8)
    out = jax.block_until_ready(out)

    # Tight check: reference mirrors the kernel's bf16 matmul boundaries.
    ref_b = ref_block_prepared(x, context, prep)
    np.testing.assert_allclose(np.asarray(out), np.asarray(ref_b),
                               rtol=5e-3, atol=5e-3)

    # Semantic check: full-f32 reference on the original torch-layout weights.
    ref_f = ref_block_f32(x, context, raw, heads=n_heads, dim_head=d_head)
    np.testing.assert_allclose(np.asarray(out), np.asarray(ref_f),
                               rtol=2e-2, atol=2e-2)

    print("KERNEL_OK")
</pallas_src>

<mosaic_0001>
module attributes {stable_mosaic.version = 11 : i64} {
  func.func @kv_prologue_kernel(%arg0: i32, %arg1: i32, %arg2: memref<1x16x32xf32, #tpu.memory_space<vmem>>, %arg3: memref<1x8x16xf32, #tpu.memory_space<vmem>>, %arg4: memref<1x32xf32, #tpu.memory_space<vmem>>, %arg5: memref<1x32xf32, #tpu.memory_space<vmem>>, %arg6: memref<1x32x8xbf16, #tpu.memory_space<vmem>>, %arg7: memref<1x32x8xbf16, #tpu.memory_space<vmem>>, %arg8: memref<1x16x8xbf16, #tpu.memory_space<vmem>>, %arg9: memref<1x16x8xbf16, #tpu.memory_space<vmem>>, %arg10: memref<1x1x16x8xbf16, #tpu.memory_space<vmem>>, %arg11: memref<1x1x16x8xbf16, #tpu.memory_space<vmem>>, %arg12: memref<1x1x8x8xbf16, #tpu.memory_space<vmem>>, %arg13: memref<1x1x8x8xbf16, #tpu.memory_space<vmem>>, %arg14: memref<16x32xbf16, #tpu.memory_space<vmem>>) attributes {dimension_semantics = [#tpu.dimension_semantics<parallel>, #tpu.dimension_semantics<arbitrary>], iteration_bounds = array<i64: 2, 4>, scalar_prefetch = 0 : i64, scratch_operands = 1 : i64, tpu.core_type = #tpu.core_type<tc>, window_params = [{transform_indices = @transform_0, window_bounds = array<i64: 1, 16, 32>}, {transform_indices = @transform_1, window_bounds = array<i64: 1, 8, 16>}, {pipeline_mode = #tpu.pipeline_mode<synchronous>, transform_indices = @transform_2, window_bounds = array<i64: 1, 32>}, {pipeline_mode = #tpu.pipeline_mode<synchronous>, transform_indices = @transform_3, window_bounds = array<i64: 1, 32>}, {transform_indices = @transform_4, window_bounds = array<i64: 1, 32, 8>}, {transform_indices = @transform_5, window_bounds = array<i64: 1, 32, 8>}, {transform_indices = @transform_6, window_bounds = array<i64: 1, 16, 8>}, {transform_indices = @transform_7, window_bounds = array<i64: 1, 16, 8>}, {transform_indices = @transform_8, window_bounds = array<i64: 1, 1, 16, 8>}, {transform_indices = @transform_9, window_bounds = array<i64: 1, 1, 16, 8>}, {transform_indices = @transform_10, window_bounds = array<i64: 1, 1, 8, 8>}, {transform_indices = @transform_11, window_bounds = array<i64: 1, 1, 8, 8>}]} {
    %c0_i32 = arith.constant 0 : i32
    %0 = arith.cmpi eq, %arg1, %c0_i32 : i32
    %1 = arith.extui %0 : i1 to i32
    %c0_i32_0 = arith.constant 0 : i32
    %2 = arith.cmpi ne, %1, %c0_i32_0 : i32
    scf.if %2 {
      %c0_36 = arith.constant 0 : index
      %c0_37 = arith.constant 0 : index
      %c0_38 = arith.constant 0 : index
      %35 = vector.load %arg2[%c0_36, %c0_37, %c0_38] : memref<1x16x32xf32, #tpu.memory_space<vmem>>, vector<1x16x32xf32>
      %36 = vector.shape_cast %35 : vector<1x16x32xf32> to vector<16x32xf32>
      %c0_39 = arith.constant 0 : index
      %c0_40 = arith.constant 0 : index
      %37 = vector.load %arg4[%c0_39, %c0_40] : memref<1x32xf32, #tpu.memory_space<vmem>>, vector<1x32xf32>
      %c0_41 = arith.constant 0 : index
      %c0_42 = arith.constant 0 : index
      %38 = vector.load %arg5[%c0_41, %c0_42] : memref<1x32xf32, #tpu.memory_space<vmem>>, vector<1x32xf32>
      %cst_43 = arith.constant dense<0.000000e+00> : vector<16xf32>
      %39 = vector.multi_reduction <add>, %36, %cst_43 [1] : vector<16x32xf32> to vector<16xf32>
      %40 = vector.shape_cast %39 : vector<16xf32> to vector<16x1xf32>
      %cst_44 = arith.constant 3.200000e+01 : f32
      %41 = vector.broadcast %cst_44 : f32 to vector<16x1xf32>
      %42 = arith.divf %40, %41 : vector<16x1xf32>
      %43 = vector.broadcast %42 : vector<16x1xf32> to vector<16x32xf32>
      %44 = arith.subf %36, %43 : vector<16x32xf32>
      %45 = arith.mulf %44, %44 : vector<16x32xf32>
      %cst_45 = arith.constant dense<0.000000e+00> : vector<16xf32>
      %46 = vector.multi_reduction <add>, %45, %cst_45 [1] : vector<16x32xf32> to vector<16xf32>
      %47 = vector.shape_cast %46 : vector<16xf32> to vector<16x1xf32>
      %cst_46 = arith.constant 3.200000e+01 : f32
      %48 = vector.broadcast %cst_46 : f32 to vector<16x1xf32>
      %49 = arith.divf %47, %48 : vector<16x1xf32>
      %50 = vector.broadcast %42 : vector<16x1xf32> to vector<16x32xf32>
      %51 = arith.subf %36, %50 : vector<16x32xf32>
      %cst_47 = arith.constant 9.99999974E-6 : f32
      %52 = vector.broadcast %cst_47 : f32 to vector<16x1xf32>
      %53 = arith.addf %49, %52 : vector<16x1xf32>
      %54 = math.rsqrt %53 : vector<16x1xf32>
      %55 = vector.broadcast %54 : vector<16x1xf32> to vector<16x32xf32>
      %56 = arith.mulf %51, %55 : vector<16x32xf32>
      %57 = vector.broadcast %37 : vector<1x32xf32> to vector<16x32xf32>
      %58 = arith.mulf %56, %57 : vector<16x32xf32>
      %59 = vector.broadcast %38 : vector<1x32xf32> to vector<16x32xf32>
      %60 = arith.addf %58, %59 : vector<16x32xf32>
      %61 = arith.truncf %60 : vector<16x32xf32> to vector<16x32xbf16>
      %c0_48 = arith.constant 0 : index
      %c0_49 = arith.constant 0 : index
      %62 = vector.load %arg14[%c0_48, %c0_49] : memref<16x32xbf16, #tpu.memory_space<vmem>>, vector<16x32xbf16>
      tpu.vector_store %arg14[%c0_48, %c0_49], %61 {strides = array<i32>} : memref<16x32xbf16, #tpu.memory_space<vmem>>, vector<16x32xbf16>,
    } else {
    }
    %c0 = arith.constant 0 : index
    %c0_1 = arith.constant 0 : index
    %3 = vector.load %arg14[%c0, %c0_1] : memref<16x32xbf16, #tpu.memory_space<vmem>>, vector<16x32xbf16>
    %c0_2 = arith.constant 0 : index
    %c0_3 = arith.constant 0 : index
    %c0_4 = arith.constant 0 : index
    %4 = vector.load %arg3[%c0_2, %c0_3, %c0_4] : memref<1x8x16xf32, #tpu.memory_space<vmem>>, vector<1x8x16xf32>
    %5 = vector.shape_cast %4 : vector<1x8x16xf32> to vector<8x16xf32>
    %6 = arith.truncf %5 : vector<8x16xf32> to vector<8x16xbf16>
    %c0_5 = arith.constant 0 : index
    %c0_6 = arith.constant 0 : index
    %c0_7 = arith.constant 0 : index
    %7 = vector.load %arg6[%c0_5, %c0_6, %c0_7] : memref<1x32x8xbf16, #tpu.memory_space<vmem>>, vector<1x32x8xbf16>
    %8 = vector.shape_cast %7 : vector<1x32x8xbf16> to vector<32x8xbf16>
    %cst = arith.constant dense<0.000000e+00> : vector<16x8xf32>
    %9 = tpu.matmul %3, %8, %cst {dimension_numbers = #tpu.dot_dimension_numbers<[1], [0], [0], [1], [0, 0, 1, 1], [], []>} : vector<16x32xbf16>, vector<32x8xbf16>, vector<16x8xf32> -> vector<16x8xf32>
    %10 = arith.truncf %9 : vector<16x8xf32> to vector<16x8xbf16>
    %c0_8 = arith.constant 0 : index
    %c0_9 = arith.constant 0 : index
    %c0_10 = arith.constant 0 : index
    %c0_11 = arith.constant 0 : index
    %11 = vector.load %arg10[%c0_8, %c0_9, %c0_10, %c0_11] : memref<1x1x16x8xbf16, #tpu.memory_space<vmem>>, vector<1x1x16x8xbf16>
    %12 = vector.shape_cast %11 : vector<1x1x16x8xbf16> to vector<16x8xbf16>
    %13 = vector.shape_cast %10 : vector<16x8xbf16> to vector<1x1x16x8xbf16>
    tpu.vector_store %arg10[%c0_8, %c0_9, %c0_10, %c0_11], %13 {strides = array<i32>} : memref<1x1x16x8xbf16, #tpu.memory_space<vmem>>, vector<1x1x16x8xbf16>,
    %c0_12 = arith.constant 0 : index
    %c0_13 = arith.constant 0 : index
    %c0_14 = arith.constant 0 : index
    %14 = vector.load %arg7[%c0_12, %c0_13, %c0_14] : memref<1x32x8xbf16, #tpu.memory_space<vmem>>, vector<1x32x8xbf16>
    %15 = vector.shape_cast %14 : vector<1x32x8xbf16> to vector<32x8xbf16>
    %cst_15 = arith.constant dense<0.000000e+00> : vector<16x8xf32>
    %16 = tpu.matmul %3, %15, %cst_15 {dimension_numbers = #tpu.dot_dimension_numbers<[1], [0], [0], [1], [0, 0, 1, 1], [], []>} : vector<16x32xbf16>, vector<32x8xbf16>, vector<16x8xf32> -> vector<16x8xf32>
    %17 = arith.truncf %16 : vector<16x8xf32> to vector<16x8xbf16>
    %c0_16 = arith.constant 0 : index
    %c0_17 = arith.constant 0 : index
    %c0_18 = arith.constant 0 : index
    %c0_19 = arith.constant 0 : index
    %18 = vector.load %arg11[%c0_16, %c0_17, %c0_18, %c0_19] : memref<1x1x16x8xbf16, #tpu.memory_space<vmem>>, vector<1x1x16x8xbf16>
    %19 = vector.shape_cast %18 : vector<1x1x16x8xbf16> to vector<16x8xbf16>
    %20 = vector.shape_cast %17 : vector<16x8xbf16> to vector<1x1x16x8xbf16>
    tpu.vector_store %arg11[%c0_16, %c0_17, %c0_18, %c0_19], %20 {strides = array<i32>} : memref<1x1x16x8xbf16, #tpu.memory_space<vmem>>, vector<1x1x16x8xbf16>,
    %c0_20 = arith.constant 0 : index
    %c0_21 = arith.constant 0 : index
    %c0_22 = arith.constant 0 : index
    %21 = vector.load %arg8[%c0_20, %c0_21, %c0_22] : memref<1x16x8xbf16, #tpu.memory_space<vmem>>, vector<1x16x8xbf16>
    %22 = vector.shape_cast %21 : vector<1x16x8xbf16> to vector<16x8xbf16>
    %cst_23 = arith.constant dense<0.000000e+00> : vector<8x8xf32>
    %23 = tpu.matmul %6, %22, %cst_23 {dimension_numbers = #tpu.dot_dimension_numbers<[1], [0], [0], [1], [0, 0, 1, 1], [], []>} : vector<8x16xbf16>, vector<16x8xbf16>, vector<8x8xf32> -> vector<8x8xf32>
    %24 = arith.truncf %23 : vector<8x8xf32> to vector<8x8xbf16>
    %c0_24 = arith.constant 0 : index
    %c0_25 = arith.constant 0 : index
    %c0_26 = arith.constant 0 : index
    %c0_27 = arith.constant 0 : index
    %25 = vector.load %arg12[%c0_24, %c0_25, %c0_26, %c0_27] : memref<1x1x8x8xbf16, #tpu.memory_space<vmem>>, vector<1x1x8x8xbf16>
    %26 = vector.shape_cast %25 : vector<1x1x8x8xbf16> to vector<8x8xbf16>
    %27 = vector.shape_cast %24 : vector<8x8xbf16> to vector<1x1x8x8xbf16>
    tpu.vector_store %arg12[%c0_24, %c0_25, %c0_26, %c0_27], %27 {strides = array<i32>} : memref<1x1x8x8xbf16, #tpu.memory_space<vmem>>, vector<1x1x8x8xbf16>,
    %c0_28 = arith.constant 0 : index
    %c0_29 = arith.constant 0 : index
    %c0_30 = arith.constant 0 : index
    %28 = vector.load %arg9[%c0_28, %c0_29, %c0_30] : memref<1x16x8xbf16, #tpu.memory_space<vmem>>, vector<1x16x8xbf16>
    %29 = vector.shape_cast %28 : vector<1x16x8xbf16> to vector<16x8xbf16>
    %cst_31 = arith.constant dense<0.000000e+00> : vector<8x8xf32>
    %30 = tpu.matmul %6, %29, %cst_31 {dimension_numbers = #tpu.dot_dimension_numbers<[1], [0], [0], [1], [0, 0, 1, 1], [], []>} : vector<8x16xbf16>, vector<16x8xbf16>, vector<8x8xf32> -> vector<8x8xf32>
    %31 = arith.truncf %30 : vector<8x8xf32> to vector<8x8xbf16>
    %c0_32 = arith.constant 0 : index
    %c0_33 = arith.constant 0 : index
    %c0_34 = arith.constant 0 : index
    %c0_35 = arith.constant 0 : index
    %32 = vector.load %arg13[%c0_32, %c0_33, %c0_34, %c0_35] : memref<1x1x8x8xbf16, #tpu.memory_space<vmem>>, vector<1x1x8x8xbf16>
    %33 = vector.shape_cast %32 : vector<1x1x8x8xbf16> to vector<8x8xbf16>
    %34 = vector.shape_cast %31 : vector<8x8xbf16> to vector<1x1x8x8xbf16>
    tpu.vector_store %arg13[%c0_32, %c0_33, %c0_34, %c0_35], %34 {strides = array<i32>} : memref<1x1x8x8xbf16, #tpu.memory_space<vmem>>, vector<1x1x8x8xbf16>,
    return
  }
  func.func @transform_0(%arg0: i32, %arg1: i32) -> (i32, i32, i32) {
    %c0_i32 = arith.constant 0 : i32
    %c0_i32_0 = arith.constant 0 : i32
    %c0_i32_1 = arith.constant 0 : i32
    return %arg0, %c0_i32, %c0_i32_0 : i32, i32, i32
  }
  func.func @transform_1(%arg0: i32, %arg1: i32) -> (i32, i32, i32) {
    %c0_i32 = arith.constant 0 : i32
    %c0_i32_0 = arith.constant 0 : i32
    %c0_i32_1 = arith.constant 0 : i32
    return %arg0, %c0_i32, %c0_i32_0 : i32, i32, i32
  }
  func.func @transform_2(%arg0: i32, %arg1: i32) -> (i32, i32) {
    %c0_i32 = arith.constant 0 : i32
    %c0_i32_0 = arith.constant 0 : i32
    %c0_i32_1 = arith.constant 0 : i32
    return %c0_i32, %c0_i32_0 : i32, i32
  }
  func.func @transform_3(%arg0: i32, %arg1: i32) -> (i32, i32) {
    %c0_i32 = arith.constant 0 : i32
    %c0_i32_0 = arith.constant 0 : i32
    %c0_i32_1 = arith.constant 0 : i32
    return %c0_i32, %c0_i32_0 : i32, i32
  }
  func.func @transform_4(%arg0: i32, %arg1: i32) -> (i32, i32, i32) {
    %c0_i32 = arith.constant 0 : i32
    %c0_i32_0 = arith.constant 0 : i32
    %c0_i32_1 = arith.constant 0 : i32
    return %arg1, %c0_i32, %c0_i32_0 : i32, i32, i32
  }
  func.func @transform_5(%arg0: i32, %arg1: i32) -> (i32, i32, i32) {
    %c0_i32 = arith.constant 0 : i32
    %c0_i32_0 = arith.constant 0 : i32
    %c0_i32_1 = arith.constant 0 : i32
    return %arg1, %c0_i32, %c0_i32_0 : i32, i32, i32
  }
  func.func @transform_6(%arg0: i32, %arg1: i32) -> (i32, i32, i32) {
    %c0_i32 = arith.constant 0 : i32
    %c0_i32_0 = arith.constant 0 : i32
    %c0_i32_1 = arith.constant 0 : i32
    return %arg1, %c0_i32, %c0_i32_0 : i32, i32, i32
  }
  func.func @transform_7(%arg0: i32, %arg1: i32) -> (i32, i32, i32) {
    %c0_i32 = arith.constant 0 : i32
    %c0_i32_0 = arith.constant 0 : i32
    %c0_i32_1 = arith.constant 0 : i32
    return %arg1, %c0_i32, %c0_i32_0 : i32, i32, i32
  }
  func.func @transform_8(%arg0: i32, %arg1: i32) -> (i32, i32, i32, i32) {
    %c0_i32 = arith.constant 0 : i32
    %c0_i32_0 = arith.constant 0 : i32
    %c0_i32_1 = arith.constant 0 : i32
    return %arg0, %arg1, %c0_i32, %c0_i32_0 : i32, i32, i32, i32
  }
  func.func @transform_9(%arg0: i32, %arg1: i32) -> (i32, i32, i32, i32) {
    %c0_i32 = arith.constant 0 : i32
    %c0_i32_0 = arith.constant 0 : i32
    %c0_i32_1 = arith.constant 0 : i32
    return %arg0, %arg1, %c0_i32, %c0_i32_0 : i32, i32, i32, i32
  }
  func.func @transform_10(%arg0: i32, %arg1: i32) -> (i32, i32, i32, i32) {
    %c0_i32 = arith.constant 0 : i32
    %c0_i32_0 = arith.constant 0 : i32
    %c0_i32_1 = arith.constant 0 : i32
    return %arg0, %arg1, %c0_i32, %c0_i32_0 : i32, i32, i32, i32
  }
  func.func @transform_11(%arg0: i32, %arg1: i32) -> (i32, i32, i32, i32) {
    %c0_i32 = arith.constant 0 : i32
    %c0_i32_0 = arith.constant 0 : i32
    %c0_i32_1 = arith.constant 0 : i32
    return %arg0, %arg1, %c0_i32, %c0_i32_0 : i32, i32, i32, i32
  }
}

module attributes {stable_mosaic.version = 11 : i64} {
  func.func @kv_prologue_kernel(%arg0: i32, %arg1: i32, %arg2: memref<1x16x32xf32, #tpu.memory_space<vmem>>, %arg3: memref<1x8x16xf32, #tpu.memory_space<vmem>>, %arg4: memref<1x32xf32, #tpu.memory_space<vmem>>, %arg5: memref<1x32xf32, #tpu.memory_space<vmem>>, %arg6: memref<1x32x8xbf16, #tpu.memory_space<vmem>>, %arg7: memref<1x32x8xbf16, #tpu.memory_space<vmem>>, %arg8: memref<1x16x8xbf16, #tpu.memory_space<vmem>>, %arg9: memref<1x16x8xbf16, #tpu.memory_space<vmem>>, %arg10: memref<1x1x16x8xbf16, #tpu.memory_space<vmem>>, %arg11: memref<1x1x16x8xbf16, #tpu.memory_space<vmem>>, %arg12: memref<1x1x8x8xbf16, #tpu.memory_space<vmem>>, %arg13: memref<1x1x8x8xbf16, #tpu.memory_space<vmem>>, %arg14: memref<16x32xbf16, #tpu.memory_space<vmem>>) attributes {dimension_semantics = [#tpu.dimension_semantics<parallel>, #tpu.dimension_semantics<arbitrary>], iteration_bounds = array<i64: 2, 4>, scalar_prefetch = 0 : i64, scratch_operands = 1 : i64, tpu.core_type = #tpu.core_type<tc>, window_params = [{transform_indices = @transform_0, window_bounds = array<i64: 1, 16, 32>}, {transform_indices = @transform_1, window_bounds = array<i64: 1, 8, 16>}, {pipeline_mode = #tpu.pipeline_mode<synchronous>, transform_indices = @transform_2, window_bounds = array<i64: 1, 32>}, {pipeline_mode = #tpu.pipeline_mode<synchronous>, transform_indices = @transform_3, window_bounds = array<i64: 1, 32>}, {transform_indices = @transform_4, window_bounds = array<i64: 1, 32, 8>}, {transform_indices = @transform_5, window_bounds = array<i64: 1, 32, 8>}, {transform_indices = @transform_6, window_bounds = array<i64: 1, 16, 8>}, {transform_indices = @transform_7, window_bounds = array<i64: 1, 16, 8>}, {transform_indices = @transform_8, window_bounds = array<i64: 1, 1, 16, 8>}, {transform_indices = @transform_9, window_bounds = array<i64: 1, 1, 16, 8>}, {transform_indices = @transform_10, window_bounds = array<i64: 1, 1, 8, 8>}, {transform_indices = @transform_11, window_bounds = array<i64: 1, 1, 8, 8>}]} {
    %c0_i32 = arith.constant 0 : i32
    %0 = arith.cmpi eq, %arg1, %c0_i32 : i32
    %1 = arith.extui %0 : i1 to i32
    %c0_i32_0 = arith.constant 0 : i32
    %2 = arith.cmpi ne, %1, %c0_i32_0 : i32
    scf.if %2 {
      %c0_36 = arith.constant 0 : index
      %c0_37 = arith.constant 0 : index
      %c0_38 = arith.constant 0 : index
      %35 = vector.load %arg2[%c0_36, %c0_37, %c0_38] : memref<1x16x32xf32, #tpu.memory_space<vmem>>, vector<1x16x32xf32>
      %36 = vector.shape_cast %35 : vector<1x16x32xf32> to vector<16x32xf32>
      %c0_39 = arith.constant 0 : index
      %c0_40 = arith.constant 0 : index
      %37 = vector.load %arg4[%c0_39, %c0_40] : memref<1x32xf32, #tpu.memory_space<vmem>>, vector<1x32xf32>
      %c0_41 = arith.constant 0 : index
      %c0_42 = arith.constant 0 : index
      %38 = vector.load %arg5[%c0_41, %c0_42] : memref<1x32xf32, #tpu.memory_space<vmem>>, vector<1x32xf32>
      %cst_43 = arith.constant dense<0.000000e+00> : vector<16xf32>
      %39 = vector.multi_reduction <add>, %36, %cst_43 [1] : vector<16x32xf32> to vector<16xf32>
      %40 = vector.shape_cast %39 : vector<16xf32> to vector<16x1xf32>
      %cst_44 = arith.constant 3.200000e+01 : f32
      %41 = vector.broadcast %cst_44 : f32 to vector<16x1xf32>
      %42 = arith.divf %40, %41 : vector<16x1xf32>
      %43 = vector.broadcast %42 : vector<16x1xf32> to vector<16x32xf32>
      %44 = arith.subf %36, %43 : vector<16x32xf32>
      %45 = arith.mulf %44, %44 : vector<16x32xf32>
      %cst_45 = arith.constant dense<0.000000e+00> : vector<16xf32>
      %46 = vector.multi_reduction <add>, %45, %cst_45 [1] : vector<16x32xf32> to vector<16xf32>
      %47 = vector.shape_cast %46 : vector<16xf32> to vector<16x1xf32>
      %cst_46 = arith.constant 3.200000e+01 : f32
      %48 = vector.broadcast %cst_46 : f32 to vector<16x1xf32>
      %49 = arith.divf %47, %48 : vector<16x1xf32>
      %50 = vector.broadcast %42 : vector<16x1xf32> to vector<16x32xf32>
      %51 = arith.subf %36, %50 : vector<16x32xf32>
      %cst_47 = arith.constant 9.99999974E-6 : f32
      %52 = vector.broadcast %cst_47 : f32 to vector<16x1xf32>
      %53 = arith.addf %49, %52 : vector<16x1xf32>
      %54 = math.rsqrt %53 : vector<16x1xf32>
      %55 = vector.broadcast %54 : vector<16x1xf32> to vector<16x32xf32>
      %56 = arith.mulf %51, %55 : vector<16x32xf32>
      %57 = vector.broadcast %37 : vector<1x32xf32> to vector<16x32xf32>
      %58 = arith.mulf %56, %57 : vector<16x32xf32>
      %59 = vector.broadcast %38 : vector<1x32xf32> to vector<16x32xf32>
      %60 = arith.addf %58, %59 : vector<16x32xf32>
      %61 = arith.truncf %60 : vector<16x32xf32> to vector<16x32xbf16>
      %c0_48 = arith.constant 0 : index
      %c0_49 = arith.constant 0 : index
      %62 = vector.load %arg14[%c0_48, %c0_49] : memref<16x32xbf16, #tpu.memory_space<vmem>>, vector<16x32xbf16>
      tpu.vector_store %arg14[%c0_48, %c0_49], %61 {strides = array<i32>} : memref<16x32xbf16, #tpu.memory_space<vmem>>, vector<16x32xbf16>,
    } else {
    }
    %c0 = arith.constant 0 : index
    %c0_1 = arith.constant 0 : index
    %3 = vector.load %arg14[%c0, %c0_1] : memref<16x32xbf16, #tpu.memory_space<vmem>>, vector<16x32xbf16>
    %c0_2 = arith.constant 0 : index
    %c0_3 = arith.constant 0 : index
    %c0_4 = arith.constant 0 : index
    %4 = vector.load %arg3[%c0_2, %c0_3, %c0_4] : memref<1x8x16xf32, #tpu.memory_space<vmem>>, vector<1x8x16xf32>
    %5 = vector.shape_cast %4 : vector<1x8x16xf32> to vector<8x16xf32>
    %6 = arith.truncf %5 : vector<8x16xf32> to vector<8x16xbf16>
    %c0_5 = arith.constant 0 : index
    %c0_6 = arith.constant 0 : index
    %c0_7 = arith.constant 0 : index
    %7 = vector.load %arg6[%c0_5, %c0_6, %c0_7] : memref<1x32x8xbf16, #tpu.memory_space<vmem>>, vector<1x32x8xbf16>
    %8 = vector.shape_cast %7 : vector<1x32x8xbf16> to vector<32x8xbf16>
    %cst = arith.constant dense<0.000000e+00> : vector<16x8xf32>
    %9 = tpu.matmul %3, %8, %cst {dimension_numbers = #tpu.dot_dimension_numbers<[1], [0], [0], [1], [0, 0, 1, 1], [], []>} : vector<16x32xbf16>, vector<32x8xbf16>, vector<16x8xf32> -> vector<16x8xf32>
    %10 = arith.truncf %9 : vector<16x8xf32> to vector<16x8xbf16>
    %c0_8 = arith.constant 0 : index
    %c0_9 = arith.constant 0 : index
    %c0_10 = arith.constant 0 : index
    %c0_11 = arith.constant 0 : index
    %11 = vector.load %arg10[%c0_8, %c0_9, %c0_10, %c0_11] : memref<1x1x16x8xbf16, #tpu.memory_space<vmem>>, vector<1x1x16x8xbf16>
    %12 = vector.shape_cast %11 : vector<1x1x16x8xbf16> to vector<16x8xbf16>
    %13 = vector.shape_cast %10 : vector<16x8xbf16> to vector<1x1x16x8xbf16>
    tpu.vector_store %arg10[%c0_8, %c0_9, %c0_10, %c0_11], %13 {strides = array<i32>} : memref<1x1x16x8xbf16, #tpu.memory_space<vmem>>, vector<1x1x16x8xbf16>,
    %c0_12 = arith.constant 0 : index
    %c0_13 = arith.constant 0 : index
    %c0_14 = arith.constant 0 : index
    %14 = vector.load %arg7[%c0_12, %c0_13, %c0_14] : memref<1x32x8xbf16, #tpu.memory_space<vmem>>, vector<1x32x8xbf16>
    %15 = vector.shape_cast %14 : vector<1x32x8xbf16> to vector<32x8xbf16>
    %cst_15 = arith.constant dense<0.000000e+00> : vector<16x8xf32>
    %16 = tpu.matmul %3, %15, %cst_15 {dimension_numbers = #tpu.dot_dimension_numbers<[1], [0], [0], [1], [0, 0, 1, 1], [], []>} : vector<16x32xbf16>, vector<32x8xbf16>, vector<16x8xf32> -> vector<16x8xf32>
    %17 = arith.truncf %16 : vector<16x8xf32> to vector<16x8xbf16>
    %c0_16 = arith.constant 0 : index
    %c0_17 = arith.constant 0 : index
    %c0_18 = arith.constant 0 : index
    %c0_19 = arith.constant 0 : index
    %18 = vector.load %arg11[%c0_16, %c0_17, %c0_18, %c0_19] : memref<1x1x16x8xbf16, #tpu.memory_space<vmem>>, vector<1x1x16x8xbf16>
    %19 = vector.shape_cast %18 : vector<1x1x16x8xbf16> to vector<16x8xbf16>
    %20 = vector.shape_cast %17 : vector<16x8xbf16> to vector<1x1x16x8xbf16>
    tpu.vector_store %arg11[%c0_16, %c0_17, %c0_18, %c0_19], %20 {strides = array<i32>} : memref<1x1x16x8xbf16, #tpu.memory_space<vmem>>, vector<1x1x16x8xbf16>,
    %c0_20 = arith.constant 0 : index
    %c0_21 = arith.constant 0 : index
    %c0_22 = arith.constant 0 : index
    %21 = vector.load %arg8[%c0_20, %c0_21, %c0_22] : memref<1x16x8xbf16, #tpu.memory_space<vmem>>, vector<1x16x8xbf16>
    %22 = vector.shape_cast %21 : vector<1x16x8xbf16> to vector<16x8xbf16>
    %cst_23 = arith.constant dense<0.000000e+00> : vector<8x8xf32>
    %23 = tpu.matmul %6, %22, %cst_23 {dimension_numbers = #tpu.dot_dimension_numbers<[1], [0], [0], [1], [0, 0, 1, 1], [], []>} : vector<8x16xbf16>, vector<16x8xbf16>, vector<8x8xf32> -> vector<8x8xf32>
    %24 = arith.truncf %23 : vector<8x8xf32> to vector<8x8xbf16>
    %c0_24 = arith.constant 0 : index
    %c0_25 = arith.constant 0 : index
    %c0_26 = arith.constant 0 : index
    %c0_27 = arith.constant 0 : index
    %25 = vector.load %arg12[%c0_24, %c0_25, %c0_26, %c0_27] : memref<1x1x8x8xbf16, #tpu.memory_space<vmem>>, vector<1x1x8x8xbf16>
    %26 = vector.shape_cast %25 : vector<1x1x8x8xbf16> to vector<8x8xbf16>
    %27 = vector.shape_cast %24 : vector<8x8xbf16> to vector<1x1x8x8xbf16>
    tpu.vector_store %arg12[%c0_24, %c0_25, %c0_26, %c0_27], %27 {strides = array<i32>} : memref<1x1x8x8xbf16, #tpu.memory_space<vmem>>, vector<1x1x8x8xbf16>,
    %c0_28 = arith.constant 0 : index
    %c0_29 = arith.constant 0 : index
    %c0_30 = arith.constant 0 : index
    %28 = vector.load %arg9[%c0_28, %c0_29, %c0_30] : memref<1x16x8xbf16, #tpu.memory_space<vmem>>, vector<1x16x8xbf16>
    %29 = vector.shape_cast %28 : vector<1x16x8xbf16> to vector<16x8xbf16>
    %cst_31 = arith.constant dense<0.000000e+00> : vector<8x8xf32>
    %30 = tpu.matmul %6, %29, %cst_31 {dimension_numbers = #tpu.dot_dimension_numbers<[1], [0], [0], [1], [0, 0, 1, 1], [], []>} : vector<8x16xbf16>, vector<16x8xbf16>, vector<8x8xf32> -> vector<8x8xf32>
    %31 = arith.truncf %30 : vector<8x8xf32> to vector<8x8xbf16>
    %c0_32 = arith.constant 0 : index
    %c0_33 = arith.constant 0 : index
    %c0_34 = arith.constant 0 : index
    %c0_35 = arith.constant 0 : index
    %32 = vector.load %arg13[%c0_32, %c0_33, %c0_34, %c0_35] : memref<1x1x8x8xbf16, #tpu.memory_space<vmem>>, vector<1x1x8x8xbf16>
    %33 = vector.shape_cast %32 : vector<1x1x8x8xbf16> to vector<8x8xbf16>
    %34 = vector.shape_cast %31 : vector<8x8xbf16> to vector<1x1x8x8xbf16>
    tpu.vector_store %arg13[%c0_32, %c0_33, %c0_34, %c0_35], %34 {strides = array<i32>} : memref<1x1x8x8xbf16, #tpu.memory_space<vmem>>, vector<1x1x8x8xbf16>,
    return
  }
  func.func @transform_0(%arg0: i32, %arg1: i32) -> (i32, i32, i32) {
    %c0_i32 = arith.constant 0 : i32
    %c0_i32_0 = arith.constant 0 : i32
    %c0_i32_1 = arith.constant 0 : i32
    return %arg0, %c0_i32, %c0_i32_0 : i32, i32, i32
  }
  func.func @transform_1(%arg0: i32, %arg1: i32) -> (i32, i32, i32) {
    %c0_i32 = arith.constant 0 : i32
    %c0_i32_0 = arith.constant 0 : i32
    %c0_i32_1 = arith.constant 0 : i32
    return %arg0, %c0_i32, %c0_i32_0 : i32, i32, i32
  }
  func.func @transform_2(%arg0: i32, %arg1: i32) -> (i32, i32) {
    %c0_i32 = arith.constant 0 : i32
    %c0_i32_0 = arith.constant 0 : i32
    %c0_i32_1 = arith.constant 0 : i32
    return %c0_i32, %c0_i32_0 : i32, i32
  }
  func.func @transform_3(%arg0: i32, %arg1: i32) -> (i32, i32) {
    %c0_i32 = arith.constant 0 : i32
    %c0_i32_0 = arith.constant 0 : i32
    %c0_i32_1 = arith.constant 0 : i32
    return %c0_i32, %c0_i32_0 : i32, i32
  }
  func.func @transform_4(%arg0: i32, %arg1: i32) -> (i32, i32, i32) {
    %c0_i32 = arith.constant 0 : i32
    %c0_i32_0 = arith.constant 0 : i32
    %c0_i32_1 = arith.constant 0 : i32
    return %arg1, %c0_i32, %c0_i32_0 : i32, i32, i32
  }
  func.func @transform_5(%arg0: i32, %arg1: i32) -> (i32, i32, i32) {
    %c0_i32 = arith.constant 0 : i32
    %c0_i32_0 = arith.constant 0 : i32
    %c0_i32_1 = arith.constant 0 : i32
    return %arg1, %c0_i32, %c0_i32_0 : i32, i32, i32
  }
  func.func @transform_6(%arg0: i32, %arg1: i32) -> (i32, i32, i32) {
    %c0_i32 = arith.constant 0 : i32
    %c0_i32_0 = arith.constant 0 : i32
    %c0_i32_1 = arith.constant 0 : i32
    return %arg1, %c0_i32, %c0_i32_0 : i32, i32, i32
  }
  func.func @transform_7(%arg0: i32, %arg1: i32) -> (i32, i32, i32) {
    %c0_i32 = arith.constant 0 : i32
    %c0_i32_0 = arith.constant 0 : i32
    %c0_i32_1 = arith.constant 0 : i32
    return %arg1, %c0_i32, %c0_i32_0 : i32, i32, i32
  }
  func.func @transform_8(%arg0: i32, %arg1: i32) -> (i32, i32, i32, i32) {
    %c0_i32 = arith.constant 0 : i32
    %c0_i32_0 = arith.constant 0 : i32
    %c0_i32_1 = arith.constant 0 : i32
    return %arg0, %arg1, %c0_i32, %c0_i32_0 : i32, i32, i32, i32
  }
  func.func @transform_9(%arg0: i32, %arg1: i32) -> (i32, i32, i32, i32) {
    %c0_i32 = arith.constant 0 : i32
    %c0_i32_0 = arith.constant 0 : i32
    %c0_i32_1 = arith.constant 0 : i32
    return %arg0, %arg1, %c0_i32, %c0_i32_0 : i32, i32, i32, i32
  }
  func.func @transform_10(%arg0: i32, %arg1: i32) -> (i32, i32, i32, i32) {
    %c0_i32 = arith.constant 0 : i32
    %c0_i32_0 = arith.constant 0 : i32
    %c0_i32_1 = arith.constant 0 : i32
    return %arg0, %arg1, %c0_i32, %c0_i32_0 : i32, i32, i32, i32
  }
  func.func @transform_11(%arg0: i32, %arg1: i32) -> (i32, i32, i32, i32) {
    %c0_i32 = arith.constant 0 : i32
    %c0_i32_0 = arith.constant 0 : i32
    %c0_i32_1 = arith.constant 0 : i32
    return %arg0, %arg1, %c0_i32, %c0_i32_0 : i32, i32, i32, i32
  }
}

</mosaic_0001>

<bundles_post_ra>
// kernel: tpu_custom_call.1
= control target key start
LH: loop header
LB: loop body
LE: loop exit
PB: predicated region body
PF: predicated region fallthrough
CT: control target
= control target key end

     0   :  { %s3013_s0 = inlined_call_operand.hbm [shape: f32[2,16,32], index: 0, kind: input, shape index: {}]   ;;  %s3014_s1 = inlined_call_operand.hbm [shape: f32[2,8,16], index: 1, kind: input, shape index: {}]   ;;  %s3015_s2 = inlined_call_operand.hbm [shape: f32[1,32], index: 2, kind: input, shape index: {}]   ;;  %s3016_s3 = inlined_call_operand.hbm [shape: f32[1,32], index: 3, kind: input, shape index: {}]   ;;  %s3017_s4 = inlined_call_operand.hbm [shape: bf16[4,32,8], index: 4, kind: input, shape index: {}]   ;;  %s3018_s5 = inlined_call_operand.hbm [shape: bf16[4,32,8], index: 5, kind: input, shape index: {}]   ;;  %s3019_s6 = inlined_call_operand.hbm [shape: bf16[4,16,8], index: 6, kind: input, shape index: {}]   ;;  %s3020_s7 = inlined_call_operand.hbm [shape: bf16[4,16,8], index: 7, kind: input, shape index: {}]   ;;  %s3021_s8 = inlined_call_operand.hbm [shape: bf16[2,4,16,8], index: 8, kind: output, shape index: {0}]   ;;  %s3022_s9 = inlined_call_operand.hbm [shape: bf16[2,4,16,8], index: 9, kind: output, shape index: {1}]   ;;  %s3023_s10 = inlined_call_operand.hbm [shape: bf16[2,4,8,8], index: 10, kind: output, shape index: {2}]   ;;  %s3024_s11 = inlined_call_operand.hbm [shape: bf16[2,4,8,8], index: 11, kind: output, shape index: {3}]  }
   0x1   :  { %3066 = sst [smem:[#allocation47_spill]] %s3013_s0 }
   0x2   :  { %3067 = sst [smem:[#allocation48_spill]] %s3014_s1 }
   0x3   :  { %3068 = sst [smem:[#allocation49_spill]] %s3015_s2 }
   0x4   :  { %3069 = sst [smem:[#allocation50_spill]] %s3016_s3 }
   0x5   :  { %3070 = sst [smem:[#allocation51_spill]] %s3017_s4 }
   0x6   :  { %3071 = sst [smem:[#allocation52_spill]] %s3018_s5 }
   0x7   :  { %3072 = sst [smem:[#allocation53_spill]] %s3019_s6 }
   0x8   :  { %3073 = sst [smem:[#allocation54_spill]] %s3021_s8 }
   0x9   :  { %3074 = sst [smem:[#allocation55_spill]] %s3022_s9 }
   0xa   :  { %3075 = sst [smem:[#allocation56_spill]] %s3023_s10 }
   0xb   :  { %3076 = sst [smem:[#allocation57_spill]] %s3024_s11 }
   0xc   :  { %17 = vsyncpa [#allocation4], 0 }
   0xd   :  { %19 = vsyncpa [#allocation4 + $0x1], 0 }
   0xe   :  { %20 = vsyncpa [#allocation7], 0 }
   0xf   :  { %22 = vsyncpa [#allocation7 + $0x1], 0 }
  0x10   :  { %23 = vsyncpa [#allocation10], 0 }
  0x11   :  { %24 = vsyncpa [#allocation5], 0 }
  0x12   :  { %26 = vsyncpa [#allocation5 + $0x1], 0 }
  0x13   :  { %27 = vsyncpa [#allocation17], 0 }
  0x14   :  { %29 = vsyncpa [#allocation17 + $0x1], 0 }
  0x15   :  { %30 = vsyncpa [#allocation20], 0 }
  0x16   :  { %32 = vsyncpa [#allocation20 + $0x1], 0  ;;  %s2257_s17 = smov 0   ;;  %s2259_s18 = smov 0  }
  0x17   :  { %s2261_s19 = smov 0   ;;  %s2263_s20 = smov 0  }
  0x18   :  { %s2265_s21 = smov 0   ;;  %s2267_s22 = smov 0  }
  0x19   :  { %s2269_s23 = smov 0   ;;  %s2271_s24 = smov 0  }
  0x1a   :  { %s2273_s25 = smov 0   ;;  %s2275_s26 = smov 0  }
  0x1b   :  { %s2277_s27 = smov 0   ;;  %s2279_s28 = smov 0  }
  0x1c   :  { %s2281_s29 = smov 0   ;;  %s2283_s30 = smov 0  }
  0x1d LB: > { %3077 = sst [smem:[#allocation32_spill]] %s2123_s17  ;;  %s2324_s12 = sadd.s32 4294967295, %s2175_s30   ;;  %s2175_s30 = sphi %s2283_s30, %s38_s30   ;;  %s2171_s29 = sphi %s2281_s29, %s3165_s29   ;;  %s2167_s28 = sphi %s2279_s28, %s3174_s28   ;;  %s2163_s27 = sphi %s2277_s27, %s3163_s27   ;;  %s2159_s26 = sphi %s2275_s26, %s3173_s26   ;;  %s2155_s25 = sphi %s2273_s25, %s3172_s25   ;;  %s2151_s24 = sphi %s2271_s24, %s3171_s24   ;;  %s2147_s23 = sphi %s2269_s23, %s3162_s23   ;;  %s2143_s22 = sphi %s2267_s22, %s3170_s22   ;;  %s2139_s21 = sphi %s2265_s21, %s3169_s21   ;;  %s2135_s20 = sphi %s2263_s20, %s3161_s20   ;;  %s2131_s19 = sphi %s2261_s19, %s3168_s19   ;;  %s2127_s18 = sphi %s2259_s18, %s3167_s18   ;;  %s2123_s17 = sphi %s2257_s17, %s3166_s17  }
  0x1e   : > { %3078 = sst [smem:[#allocation33_spill]] %s2127_s18  ;;  %s3029_s13 = sadd.s32 4294967294, %s2175_s30  }
  0x1f   : > { %3079 = sst [smem:[#allocation34_spill]] %s2139_s21  ;;  %p3028_p0 = scmp.eq.s32.totalorder %s2175_s30, 0 }
  0x20   : > { %3080 = sst [smem:[#allocation35_spill]] %s2151_s24  ;;  %p70_p1 = scmp.ne.s32.totalorder %s2151_s24, %s2147_s23 }
  0x21   : > { %3081 = sst [smem:[#allocation36_spill]] %s2159_s26  ;;  %p3040_p2 = scmp.eq.s32.totalorder %s2324_s12, 0 }
  0x22   : > { %3082 = sst [smem:[#allocation37_spill]] %s2163_s27  ;;  %p158_p3 = scmp.ne.s32.totalorder %s2143_s22, %s2139_s21 }
  0x23   : > { %3083 = sst [smem:[#allocation38_spill]] %s2171_s29  ;;  %p164_p4 = scmp.ne.s32.totalorder %s2139_s21, %s2135_s20 }
  0x24   : > { %3084 = sst [smem:[#allocation39_spill]] %s2324_s12  ;;  %p2336_p5 = por %p3040_p2, %p70_p1 }
  0x25   : > { %p2343_p6 = por %p158_p3, %p3028_p0  ;;  %p2349_p7 = por %p164_p4, %p3040_p2 }
  0x26   : > { %s3085_s15 = scalar_select %p2336_p5, 1, 0 }
  0x27   : > { %s3087_s11 = scalar_select %p2343_p6, 1, 0 }
  0x28   : > { %3086 = sst [smem:[#allocation40_spill]] %s3085_s15  ;;  %p267_p8 = scmp.ne.s32.totalorder %s2131_s19, %s2127_s18 }
  0x29   : > { %s3088_s23 = scalar_select %p2349_p7, 1, 0 }
  0x2a   : > { %p268_p9 = scmp.eq.s32.totalorder %s2324_s12, 7  ;;  %p273_p10 = scmp.ne.s32.totalorder %s2127_s18, %s2123_s17 }
  0x2b   : > { %3089 = sst [smem:[#allocation41_spill]] %s3088_s23  ;;  %p274_p11 = scmp.eq.s32.totalorder %s3029_s13, 7 }
  0x2c   : > { %p2360_p12 = por %p268_p9, %p267_p8  ;;  %p1354_p13 = scmp.ge.s32.totalorder %s2175_s30, 1 }
  0x2d   : > { %p2365_p1 = por %p274_p11, %p273_p10  ;;  %p365_p3 = scmp.lt.s32.totalorder %s2175_s30, 9 }
  0x2e   : > { %s3090_s20 = scalar_select %p2360_p12, 1, 0 }
  0x2f   : > { %s3092_s16 = scalar_select %p2365_p1, 1, 0 }
  0x30   : > { %3091 = sst [smem:[#allocation42_spill]] %s3090_s20  ;;  %p2370_p4 = pnand %p1354_p13, %p365_p3 }
  0x31   : > { %3093 = sst [smem:[#allocation43_spill]] %s3092_s16  ;;  %s2177_s10 = smov [#allocation8]  }
  0x32   : > { %s3094_s14 = scalar_select %p2370_p4, 1, 0 }
  0x33   : > { %s378_s8 = sshll.u32 %s2177_s10, 4  ;;  %p1496_p0 = pneg %p2370_p4  ;;  %s379_s8 = int_to_ptr.vmem [resolvable:$true] %s378_s8 }
  0x34   : > { %3095 = sst [smem:[#allocation44_spill]] %s3094_s14  ;;  %s3097_s2 = sld [smem:[#allocation49_spill]] }
  0x35   : > { %p2378_p8 = pnand %p1496_p0, %p3040_p2 }
  0x37   : > { %s3096_s13 = scalar_select %p2378_p8, 1, 0 }
  0x38   : > { %p3047_p11 = pneg %p2378_p8 }
  0x3a   : > { %s1673_s27 = scalar_lea.hbm %s3097_s2, 16 }
  0x3b   : > { %p1674_p10 = scmp.ne.s32.totalorder %s3097_s2, %s1673_s27  ;;  %p1680_p3 = scmp.lt.u32.totalorder %s1673_s27, %s3097_s2 }
  0x3d   : > { %p1676_p0 = pnand %p3047_p11, %p1674_p10 }
  0x3f   : > { %p1677_p13 = pneg %p1676_p0 }
  0x41   : > { %p1682_p2 = pnand %p1680_p3, %p1677_p13 }
  0x43   : > { %1685 = shalt.err (!%p1682_p2)
}
  0x44   : > { %s1686_s16 = scalar_lea.vmem %s379_s8, 16  ;;  %s1693_s9 = scalar_lea.vmem %s379_s8, 32 }
  0x45   : > { %p1687_p9 = scmp.ne.s32.totalorder %s379_s8, %s1686_s16  ;;  %p1694_p7 = scmp.lt.s32.totalorder %s379_s8, %s379_s8 }
  0x46   : > { %p1695_p5 = scmp.lt.s32.totalorder %s1693_s9, %s1686_s16 }
  0x47   : > { %p1689_p1 = pnand %p1687_p9, %p3047_p11 }
  0x48   : > { %p1696_p4 = por %p1695_p5, %p1694_p7 }
  0x49   : > { %p1690_p12 = pneg %p1689_p1 }
  0x4b   : > { %p1697_p6 = pnand %p1696_p4, %p1690_p12 }
  0x4d   : > { %1700 = shalt.err (!%p1697_p6)
}
  0x4e   : > { %1499 = dma.hbm_to_vmem [thread:$0]  (!%p2378_p8), %s3097_s2, 16, %s379_s8, [#allocation7]  }
  0x4f   : > { %p3098_p2 = scmp.ne.s32.totalorder %s2155_s25, %s2151_s24  ;;  %p3099_p5 = scmp.eq.s32.totalorder %s2175_s30, 0 }
  0x50   : > { %p1537_p6 = scmp.lt.s32.totalorder %s2175_s30, 8  ;;  %s3046_s27 = sand.u32 1, %s2175_s30  }
  0x51   : > { %p66_p7 = por %p3099_p5, %p3098_p2  ;;  %s3045_s16 = sand.u32 1, %s2155_s25  }
  0x52   : > { %s1358_s23 = sshll.u32 %s3045_s16, 4  ;;  %s1421_s20 = sshll.u32 %s2171_s29, 8 }
  0x53   : > { %s3100_s0 = sld [smem:[#allocation47_spill]]  ;;  %s404_s26 = scalar_lea.vmem [#allocation3], %s1358_s23 }
  0x54   : > { %s411_s8 = sshll.u32 %s404_s26, 4  ;;  %p2426_p12 = pnand %p1537_p6, %p66_p7  ;;  %s2424_s8 = int_to_ptr.vmem [resolvable:$true] %s411_s8 }
  0x55   : > { %p3102_p1 = scmp.ne.s32.totalorder %s3087_s11, 0 }
  0x56   : > { %p1703_p10 = pneg %p2426_p12 }
  0x57   : > { %p2432_p4 = pnand %p1537_p6, %p3102_p1 }
  0x59   : > { %s2422_s18 = scalar_lea.hbm %s3100_s0, %s1421_s20  ;;  %s2438_s20 = scalar_lea.sflag [#allocation4], %s3046_s27 }
  0x5a   : > { %s3103_s16 = scalar_select %p2432_p4, 1, 0 }
  0x5b   : > { %s1701_s10 = scalar_lea.hbm %s2422_s18, 256  ;;  %s1706_s11 = scalar_lea.hbm %s3100_s0, 512 }
  0x5c   : > { %p1702_p9 = scmp.ne.s32.totalorder %s2422_s18, %s1701_s10  ;;  %p1707_p3 = scmp.lt.u32.totalorder %s2422_s18, %s3100_s0 }
  0x5d   : > { %p1708_p2 = scmp.lt.u32.totalorder %s1706_s11, %s1701_s10  ;;  %p1710_p7 = scmp.lt.u32.totalorder %s1701_s10, %s2422_s18 }
  0x5e   : > { %p1704_p0 = pnand %p1703_p10, %p1702_p9 }
  0x5f   : > { %p1709_p5 = por %p1708_p2, %p1707_p3 }
  0x60   : > { %p1705_p13 = pneg %p1704_p0 }
  0x61   : > { %p1711_p6 = por %p1710_p7, %p1709_p5 }
  0x63   : > { %p1712_p1 = pnand %p1711_p6, %p1705_p13 }
  0x65   : > { %1715 = shalt.err (!%p1712_p1)
}
  0x66   : > { %s1716_s27 = scalar_lea.vmem %s2424_s8, 256  ;;  %s2178_s23 = smov [#allocation3]  }
  0x67   : > { %p1717_p9 = scmp.ne.s32.totalorder %s2424_s8, %s1716_s27  ;;  %s1721_s9 = sshll.u32 %s2178_s23, 4  ;;  %s1722_s9 = int_to_ptr.vmem [resolvable:$false] %s1721_s9 }
  0x68   : > { %s1723_s2 = scalar_lea.vmem %s1722_s9, 512  ;;  %p1724_p8 = scmp.lt.s32.totalorder %s2424_s8, %s1722_s9 }
  0x69   : > { %p1719_p0 = pnand %p1717_p9, %p1703_p10  ;;  %p1725_p3 = scmp.lt.s32.totalorder %s1723_s2, %s1716_s27 }
  0x6b   : > { %p1720_p11 = pneg %p1719_p0  ;;  %p1726_p2 = por %p1725_p3, %p1724_p8 }
  0x6d   : > { %p1727_p5 = pnand %p1726_p2, %p1720_p11 }
  0x6f   : > { %1730 = shalt.err (!%p1727_p5)
}
  0x70   : > { %s2179_s10 = smov 128   ;;  %s2180_s11 = smov 8  }
  0x71   : > { %1506 = dma.hbm_to_vmem [thread:$0]  (!%p2426_p12), %s2422_s18, 256, %s2424_s8, %s2438_s20, %s2179_s10, %s2179_s10, %s2180_s11  }
  0x72   : > { %s3104_s26 = sand.u32 1, %s2155_s25   ;;  %s1362_s0 = sshll.u32 %s2171_s29, 7 }
  0x73   : > { %s1361_s23 = sshll.u32 %s3104_s26, 3  ;;  %s3105_s1 = sld [smem:[#allocation48_spill]] }
  0x74   : > { %s425_s21 = scalar_lea.vmem [#allocation6], %s1361_s23  ;;  %s3106_s24 = sand.u32 1, %s2175_s30  }
  0x75   : > { %s432_s15 = sshll.u32 %s425_s21, 4  ;;  %s2476_s12 = scalar_lea.sflag [#allocation7], %s3106_s24  ;;  %s433_s15 = int_to_ptr.vmem [resolvable:$true] %s432_s15 }
  0x79   : > { %s2472_s2 = scalar_lea.hbm %s3105_s1, %s1362_s0  ;;  %s1736_s0 = scalar_lea.hbm %s3105_s1, 256 }
  0x7a   : > { %s1731_s14 = scalar_lea.hbm %s2472_s2, 128  ;;  %p1737_p7 = scmp.lt.u32.totalorder %s2472_s2, %s3105_s1 }
  0x7b   : > { %p1732_p8 = scmp.ne.s32.totalorder %s2472_s2, %s1731_s14  ;;  %p1738_p6 = scmp.lt.u32.totalorder %s1736_s0, %s1731_s14 }
  0x7c   : > { %p1740_p9 = scmp.lt.u32.totalorder %s1731_s14, %s2472_s2 }
  0x7d   : > { %p1734_p11 = pnand %p1732_p8, %p1703_p10  ;;  %p1739_p1 = por %p1738_p6, %p1737_p7 }
  0x7f   : > { %p1735_p13 = pneg %p1734_p11  ;;  %p1741_p0 = por %p1740_p9, %p1739_p1 }
  0x81   : > { %p1742_p3 = pnand %p1741_p0, %p1735_p13 }
  0x83   : > { %1745 = shalt.err (!%p1742_p3)
}
  0x84   : > { %s1746_s21 = scalar_lea.vmem %s433_s15, 128  ;;  %s2181_s24 = smov [#allocation6]  }
  0x85   : > { %p1747_p2 = scmp.ne.s32.totalorder %s433_s15, %s1746_s21  ;;  %s1751_s26 = sshll.u32 %s2181_s24, 4  ;;  %s1752_s26 = int_to_ptr.vmem [resolvable:$false] %s1751_s26 }
  0x86   : > { %s1753_s23 = scalar_lea.vmem %s1752_s26, 256  ;;  %p1754_p11 = scmp.lt.s32.totalorder %s433_s15, %s1752_s26 }
  0x87   : > { %p1749_p5 = pnand %p1747_p2, %p1703_p10  ;;  %p1755_p4 = scmp.lt.s32.totalorder %s1753_s23, %s1746_s21 }
  0x89   : > { %p1750_p8 = pneg %p1749_p5  ;;  %p1756_p6 = por %p1755_p4, %p1754_p11 }
  0x8b   : > { %p1757_p7 = pnand %p1756_p6, %p1750_p8 }
  0x8d   : > { %1760 = shalt.err (!%p1757_p7)
}
  0x8e   : > { %1509 = dma.hbm_to_vmem [thread:$0]  (!%p2426_p12), %s2472_s2, 128, %s433_s15, %s2476_s12  }
  0x8f   : > { %s47_s14 = sadd.s32 1, %s2167_s28  ;;  %s3058_s9 = sand.u32 1, %s2143_s22  }
  0x90   : > { %p48_p4 = scmp.ge.s32.totalorder %s47_s14, 4  ;;  %s2502_s27 = sshll.u32 %s3058_s9, 4 }
  0x91   : > { %s3059_s17 = sshll.u32 %s2167_s28, 8  ;;  %s3108_s18 = sadd.s32 1, %s2171_s29 }
  0x92   : > { %s3176_s14 = smov (%p48_p4, %s47_s14), 0  ;;  %s3178_s18 = smov (!%p48_p4, %s3108_s18), %s2171_s29 }
  0x93   : > { %3107 = sst [smem:[#allocation45_spill]] %s3176_s14  ;;  %s148_s8 = ssub.s32 %s2167_s28, %s3176_s14 }
  0x94   : > { %s3109_s4 = sld [smem:[#allocation51_spill]]  ;;  %p52_p12 = scmp.ge.s32.totalorder %s3178_s18, 2 }
  0x95   : > { %p149_p10 = scmp.eq.s32.totalorder %s148_s8, 0  ;;  %s443_s10 = scalar_lea.vmem [#allocation11], %s2502_s27 }
  0x96   : > { %s450_s11 = sshll.u32 %s443_s10, 4  ;;  %s3180_s18 = smov (%p52_p12, %s3178_s18), 0  ;;  %s2529_s11 = int_to_ptr.vmem [resolvable:$true] %s450_s11 }
  0x97   : > { %3110 = sst [smem:[#allocation46_spill]] %s3180_s18  ;;  %s3111_s21 = sadd.s32 1, %s2143_s22 }
  0x98   : > { %s2525_s24 = scalar_select %p149_p10, %s2143_s22, %s3111_s21  }
  0x99   : > { %s54_s26 = ssub.s32 %s2171_s29, %s3180_s18  ;;  %s3112_s15 = sadd.s32 1, %s2155_s25 }
  0x9a   : > { %s2517_s0 = scalar_lea.hbm %s3109_s4, %s3059_s17  ;;  %p55_p13 = scmp.eq.s32.totalorder %s54_s26, 0 }
  0x9b   : > { %s254_s23 = sor.u32 %s148_s8, %s54_s26  ;;  %s3113_s9 = sadd.s32 1, %s2131_s19 }
  0x9c   : > { %p255_p1 = scmp.eq.s32.totalorder %s254_s23, 0  ;;  %s1761_s10 = scalar_lea.hbm %s2517_s0, 256 }
  0x9d   : > { %s2534_s2 = scalar_select %p55_p13, %s2155_s25, %s3112_s15  }
  0x9e   : > { %s2539_s17 = scalar_select %p255_p1, %s2131_s19, %s3113_s9  }
  0x9f   : > { %p1762_p9 = scmp.ne.s32.totalorder %s2517_s0, %s1761_s10  ;;  %p3114_p0 = scmp.ne.s32.totalorder %s3103_s16, 0 }
  0xa0   : > { %s1766_s26 = scalar_lea.hbm %s3109_s4, 1024  ;;  %p1767_p8 = scmp.lt.u32.totalorder %s2517_s0, %s3109_s4 }
  0xa1   : > { %p2545_p3 = pneg %p3114_p0  ;;  %p1768_p11 = scmp.lt.u32.totalorder %s1766_s26, %s1761_s10 }
  0xa2   : > { %p1770_p7 = scmp.lt.u32.totalorder %s1761_s10, %s2517_s0 }
  0xa3   : > { %s3115_s1 = scalar_select %p2545_p3, 1, 0 }
  0xa4   : > { %p1764_p2 = pnand %p2545_p3, %p1762_p9  ;;  %p1769_p6 = por %p1768_p11, %p1767_p8 }
  0xa6   : > { %p1765_p5 = pneg %p1764_p2  ;;  %p1771_p4 = por %p1770_p7, %p1769_p6 }
  0xa8   : > { %p1772_p12 = pnand %p1771_p4, %p1765_p5 }
  0xaa   : > { %1775 = shalt.err (!%p1772_p12)
}
  0xab   : > { %s1776_s9 = scalar_lea.vmem %s2529_s11, 256  ;;  %s2182_s21 = smov [#allocation11]  }
  0xac   : > { %p1777_p10 = scmp.ne.s32.totalorder %s2529_s11, %s1776_s9  ;;  %s1781_s8 = sshll.u32 %s2182_s21, 4  ;;  %s1782_s8 = int_to_ptr.vmem [resolvable:$false] %s1781_s8 }
  0xad   : > { %s1783_s23 = scalar_lea.vmem %s1782_s8, 512  ;;  %p1784_p9 = scmp.lt.s32.totalorder %s2529_s11, %s1782_s8 }
  0xae   : > { %p1779_p13 = pnand %p1777_p10, %p2545_p3  ;;  %p1785_p2 = scmp.lt.s32.totalorder %s1783_s23, %s1776_s9 }
  0xb0   : > { %p1780_p1 = pneg %p1779_p13  ;;  %p1786_p8 = por %p1785_p2, %p1784_p9 }
  0xb2   : > { %p1787_p11 = pnand %p1786_p8, %p1780_p1 }
  0xb4   : > { %1790 = shalt.err (!%p1787_p11)
}
  0xb5   : > { %s2183_s10 = smov 64   ;;  %s2184_s26 = smov 4  }
  0xb6   : > { %1512 = dma.hbm_to_vmem [thread:$0]  (!%p3114_p0), %s2517_s0, 256, %s2529_s11, %s2438_s20, %s2183_s10, %s2183_s10, %s2184_s26  }
  0xb7   : > { %s3116_s15 = sshll.u32 %s2167_s28, 8  ;;  %s3117_s5 = sld [smem:[#allocation52_spill]] }
  0xb8   : > { %s464_s23 = scalar_lea.vmem [#allocation12], %s2502_s27  ;;  %s2185_s18 = smov [#allocation9]  }
  0xb9   : > { %s471_s4 = sshll.u32 %s464_s23, 4  ;;  %s2582_s14 = sshll.u32 %s2185_s18, 4  ;;  %s2580_s4 = int_to_ptr.vmem [resolvable:$true] %s471_s4  ;;  %s390_s14 = int_to_ptr.vmem [resolvable:$true] %s2582_s14 }
  0xbd   : > { %s2577_s8 = scalar_lea.hbm %s3117_s5, %s3116_s15  ;;  %s1796_s15 = scalar_lea.hbm %s3117_s5, 1024 }
  0xbe   : > { %s1791_s29 = scalar_lea.hbm %s2577_s8, 256  ;;  %p1797_p4 = scmp.lt.u32.totalorder %s2577_s8, %s3117_s5 }
  0xbf   : > { %p1792_p5 = scmp.ne.s32.totalorder %s2577_s8, %s1791_s29  ;;  %p1798_p12 = scmp.lt.u32.totalorder %s1796_s15, %s1791_s29 }
  0xc0   : > { %p1800_p13 = scmp.lt.u32.totalorder %s1791_s29, %s2577_s8 }
  0xc1   : > { %p1794_p6 = pnand %p1792_p5, %p2545_p3  ;;  %p1799_p10 = por %p1798_p12, %p1797_p4 }
  0xc3   : > { %p1795_p7 = pneg %p1794_p6  ;;  %p1801_p1 = por %p1800_p13, %p1799_p10 }
  0xc5   : > { %p1802_p9 = pnand %p1801_p1, %p1795_p7 }
  0xc7   : > { %1805 = shalt.err (!%p1802_p9)
}
  0xc8   : > { %s1806_s27 = scalar_lea.vmem %s2580_s4, 256  ;;  %s2186_s18 = smov [#allocation12]  }
  0xc9   : > { %p1807_p2 = scmp.ne.s32.totalorder %s2580_s4, %s1806_s27  ;;  %s1811_s23 = sshll.u32 %s2186_s18, 4  ;;  %s1812_s23 = int_to_ptr.vmem [resolvable:$false] %s1811_s23 }
  0xca   : > { %s1813_s0 = scalar_lea.vmem %s1812_s23, 512  ;;  %p1814_p5 = scmp.lt.s32.totalorder %s2580_s4, %s1812_s23 }
  0xcb   : > { %p1809_p8 = pnand %p1807_p2, %p2545_p3  ;;  %p1815_p6 = scmp.lt.s32.totalorder %s1813_s0, %s1806_s27 }
  0xcd   : > { %p1810_p11 = pneg %p1809_p8  ;;  %p1816_p4 = por %p1815_p6, %p1814_p5 }
  0xcf   : > { %p1817_p12 = pnand %p1816_p4, %p1810_p11 }
  0xd1   : > { %1820 = shalt.err (!%p1817_p12)
}
  0xd2   : > { %1515 = dma.hbm_to_vmem [thread:$0]  (!%p3114_p0), %s2577_s8, 256, %s2580_s4, %s2476_s12, %s2183_s10, %s2183_s10, %s2184_s26  }
  0xd3   : > { %s3118_s29 = sand.u32 1, %s2143_s22   ;;  %s3119_s3 = sld [smem:[#allocation50_spill]] }
  0xd4   : > { %s2612_s11 = sshll.u32 %s3118_s29, 3  ;;  %p3120_p10 = scmp.ne.s32.totalorder %s3096_s13, 0 }
  0xd6   : > { %p3121_p13 = pneg %p3120_p10 }
  0xd9   : > { %s1821_s9 = scalar_lea.hbm %s3119_s3, 16 }
  0xda   : > { %p1822_p7 = scmp.ne.s32.totalorder %s3119_s3, %s1821_s9  ;;  %p1828_p2 = scmp.lt.u32.totalorder %s1821_s9, %s3119_s3 }
  0xdc   : > { %p1824_p1 = pnand %p1822_p7, %p3121_p13 }
  0xde   : > { %p1825_p9 = pneg %p1824_p1 }
  0xe0   : > { %p1830_p8 = pnand %p1828_p2, %p1825_p9 }
  0xe2   : > { %1833 = shalt.err (!%p1830_p8)
}
  0xe3   : > { %s1834_s4 = scalar_lea.vmem %s390_s14, 16  ;;  %p3122_p5 = pmov %p3121_p13 }
  0xe4   : > { %p1835_p11 = scmp.ne.s32.totalorder %s390_s14, %s1834_s4  ;;  %s1841_s8 = scalar_lea.vmem %s390_s14, 32 }
  0xe5   : > { %p1842_p12 = scmp.lt.s32.totalorder %s390_s14, %s390_s14  ;;  %p1843_p0 = scmp.lt.s32.totalorder %s1841_s8, %s1834_s4 }
  0xe6   : > { %p1837_p6 = pnand %p1835_p11, %p3122_p5 }
  0xe7   : > { %p1844_p3 = por %p1843_p0, %p1842_p12 }
  0xe8   : > { %p1838_p4 = pneg %p1837_p6 }
  0xea   : > { %p1845_p7 = pnand %p1844_p3, %p1838_p4 }
  0xec   : > { %1848 = shalt.err (!%p1845_p7)
}
  0xed   : > { %1502 = dma.hbm_to_vmem [thread:$0]  (!%p3120_p10), %s3119_s3, 16, %s390_s14, [#allocation10]  }
  0xee   : > { %s1424_s21 = sshll.u32 %s2167_s28, 7  ;;  %s3123_s6 = sld [smem:[#allocation53_spill]] }
  0xef   : > { %s485_s13 = scalar_lea.vmem [#allocation13], %s2612_s11  ;;  %p3124_p3 = scmp.ne.s32.totalorder %s3115_s1, 0 }
  0xf0   : > { %s492_s23 = sshll.u32 %s485_s13, 4  ;;  %s2643_s23 = int_to_ptr.vmem [resolvable:$true] %s492_s23 }
  0xf4   : > { %s2640_s18 = scalar_lea.hbm %s3123_s6, %s1424_s21  ;;  %s1854_s8 = scalar_lea.hbm %s3123_s6, 512 }
  0xf5   : > { %s1849_s0 = scalar_lea.hbm %s2640_s18, 128  ;;  %p1855_p1 = scmp.lt.u32.totalorder %s2640_s18, %s3123_s6 }
  0xf6   : > { %p1850_p0 = scmp.ne.s32.totalorder %s2640_s18, %s1849_s0  ;;  %p1856_p9 = scmp.lt.u32.totalorder %s1854_s8, %s1849_s0 }
  0xf7   : > { %p1858_p8 = scmp.lt.u32.totalorder %s1849_s0, %s2640_s18 }
  0xf8   : > { %p1852_p13 = pnand %p1850_p0, %p3124_p3  ;;  %p1857_p2 = por %p1856_p9, %p1855_p1 }
  0xfa   : > { %p1853_p10 = pneg %p1852_p13  ;;  %p1859_p11 = por %p1858_p8, %p1857_p2 }
  0xfc   : > { %p1860_p5 = pnand %p1859_p11, %p1853_p10 }
  0xfe   : > { %1863 = shalt.err (!%p1860_p5)
}
  0xff   : > { %s1864_s9 = scalar_lea.vmem %s2643_s23, 128  ;;  %s2187_s27 = smov [#allocation13]  }
 0x100   : > { %p1865_p6 = scmp.ne.s32.totalorder %s2643_s23, %s1864_s9  ;;  %s1869_s13 = sshll.u32 %s2187_s27, 4  ;;  %s1870_s13 = int_to_ptr.vmem [resolvable:$false] %s1869_s13 }
 0x101   : > { %s1871_s14 = scalar_lea.vmem %s1870_s13, 256  ;;  %p1872_p7 = scmp.lt.s32.totalorder %s2643_s23, %s1870_s13 }
 0x102   : > { %p1867_p4 = pnand %p1865_p6, %p3124_p3  ;;  %p1873_p0 = scmp.lt.s32.totalorder %s1871_s14, %s1864_s9 }
 0x104   : > { %p1868_p12 = pneg %p1867_p4  ;;  %p1874_p13 = por %p1873_p0, %p1872_p7 }
 0x106   : > { %p1875_p1 = pnand %p1874_p13, %p1868_p12 }
 0x108   : > { %1878 = shalt.err (!%p1875_p1)
}
 0x109   : > { %p3125_p10 = scmp.ne.s32.totalorder %s3103_s16, 0  ;;  %s2675_s8 = scalar_lea.hbm %s3020_s7, %s1424_s21 }
 0x10a   : > { %s506_s29 = scalar_lea.vmem [#allocation14], %s2612_s11  ;;  %s1879_s9 = scalar_lea.hbm %s2675_s8, 128 }
 0x10b   : > { %1518 = dma.hbm_to_vmem [thread:$0]  (!%p3125_p10), %s2640_s18, 128, %s2643_s23, %s2438_s20, %s2183_s10, %s2183_s10, %s2184_s26  }
 0x10c   : > { %s513_s15 = sshll.u32 %s506_s29, 4  ;;  %p1880_p9 = scmp.ne.s32.totalorder %s2675_s8, %s1879_s9  ;;  %s2678_s15 = int_to_ptr.vmem [resolvable:$true] %s513_s15 }
 0x10d   : > { %s1884_s23 = scalar_lea.hbm %s3020_s7, 512  ;;  %p1885_p11 = scmp.lt.u32.totalorder %s2675_s8, %s3020_s7 }
 0x10e   : > { %p1882_p2 = pnand %p1880_p9, %p3124_p3  ;;  %p1886_p5 = scmp.lt.u32.totalorder %s1884_s23, %s1879_s9 }
 0x10f   : > { %p1888_p4 = scmp.lt.u32.totalorder %s1879_s9, %s2675_s8 }
 0x110   : > { %p1883_p8 = pneg %p1882_p2  ;;  %p1887_p6 = por %p1886_p5, %p1885_p11 }
 0x112   : > { %p1889_p12 = por %p1888_p4, %p1887_p6 }
 0x114   : > { %p1890_p7 = pnand %p1889_p12, %p1883_p8 }
 0x116   : > { %1893 = shalt.err (!%p1890_p7)
}
 0x117   : > { %s1894_s11 = scalar_lea.vmem %s2678_s15, 128  ;;  %s2188_s13 = smov [#allocation14]  }
 0x118   : > { %p1895_p0 = scmp.ne.s32.totalorder %s2678_s15, %s1894_s11  ;;  %s1899_s14 = sshll.u32 %s2188_s13, 4  ;;  %s1900_s14 = int_to_ptr.vmem [resolvable:$false] %s1899_s14 }
 0x119   : > { %s1901_s0 = scalar_lea.vmem %s1900_s14, 256  ;;  %p1902_p9 = scmp.lt.s32.totalorder %s2678_s15, %s1900_s14 }
 0x11a   : > { %p1897_p13 = pnand %p1895_p0, %p3124_p3  ;;  %p1903_p2 = scmp.lt.s32.totalorder %s1901_s0, %s1894_s11 }
 0x11c   : > { %p1898_p1 = pneg %p1897_p13  ;;  %p1904_p11 = por %p1903_p2, %p1902_p9 }
 0x11e   : > { %p1905_p5 = pnand %p1904_p11, %p1898_p1 }
 0x120   : > { %1908 = shalt.err (!%p1905_p5)
}
 0x121   : > { %1521 = dma.hbm_to_vmem [thread:$0]  (!%p3125_p10), %s2675_s8, 128, %s2678_s15, %s2476_s12, %s2183_s10, %s2183_s10, %s2184_s26  }
 0x122   : > { %s3126_s1 = sld [smem:[#allocation44_spill]] }
 0x128   : > { %p3127_p3 = scmp.ne.s32.totalorder %s3126_s1, 0 }
 0x129   : > { %s3128_s4 = sld [smem:[#allocation39_spill]] (!%p3127_p3)  ;;  %s3129_s29 = sld [smem:[#allocation35_spill]] (!%p3127_p3) }
 0x12a   : > { %525 = sbr.rel (%p3127_p3) target bundleno = 975 (0x3cf), region = 52  ;;  %s3130_s9 = sld [smem:[#allocation40_spill]] (!%p3127_p3) }
 0x12f   : > { %s2708_s20 = sand.u32 (!%p3127_p3), 1, %s3128_s4   ;;  %s529_s18 = sand.u32 (!%p3127_p3), 1, %s3129_s29  }
 0x130   : > { %s2711_s23 = sshll.u32 (!%p3127_p3), %s529_s18, 4  ;;  %s528_s16 = scalar_lea.sflag (!%p3127_p3), [#allocation4], %s2708_s20 }
 0x131   : > { %s531_s27 = scalar_lea.vmem [#allocation3], %s2711_s23  ;;  %p3131_p8 = scmp.ne.s32.totalorder %s3130_s9, 0 }
 0x133   : > { %2078 = dma.done.wait (%p3131_p8), %s528_s16, 256  }
 0x134   : > { %2080 = vsyncadd (%p3131_p8), %s528_s16, 4294967040  ;;  %s2719_s12 = sshll.u32 %s529_s18, 3  ;;  %s537_s10 = scalar_lea.sflag [#allocation7], %s2708_s20 }
 0x135   : > { %2082 = dma.done.wait (%p3131_p8), %s537_s10, 128  }
 0x136   : > { %2084 = vsyncadd (%p3131_p8), %s537_s10, 4294967168  ;;  %p3132_p10 = scmp.eq.s32.totalorder %s3128_s4, 0 }
 0x138   : > { %2086 = dma.done.wait (%p3132_p10), [#allocation7], 16   ;;  %p3133_p6 = pmov %p3132_p10 }
 0x13a   : > { %2088 = vsyncadd (%p3133_p6), [#allocation7], 4294967280  ;;  %p3134_p4 = pmov %p3133_p6 }
 0x13c   : > { %2090 = dma.done.wait (%p3134_p4), [#allocation10], 16   ;;  %p3135_p12 = pmov %p3134_p4 }
 0x13d   : > { %s3136_s8 = sld [smem:[#allocation34_spill]]  ;;  %s3137_s15 = sld [smem:[#allocation41_spill]] }
 0x13e   : > { %2092 = vsyncadd (%p3135_p12), [#allocation10], 4294967280 }
 0x143   : > { %s555_s21 = sand.u32 1, %s3136_s8   ;;  %p3138_p7 = scmp.ne.s32.totalorder %s3137_s15, 0 }
 0x144   : > { %s2736_s11 = sshll.u32 %s555_s21, 4 }
 0x145   : > { %s557_s13 = scalar_lea.vmem [#allocation11], %s2736_s11 }
 0x146   : > { %2094 = dma.done.wait (%p3138_p7), %s528_s16, 256  }
 0x147   : > { %2096 = vsyncadd (%p3138_p7), %s528_s16, 4294967040  ;;  %s566_s14 = scalar_lea.vmem [#allocation12], %s2736_s11 }
 0x148   : > { %2098 = dma.done.wait (%p3138_p7), %s537_s10, 256  }
 0x149   : > { %2100 = vsyncadd (%p3138_p7), %s537_s10, 4294967040  ;;  %s2748_s0 = sshll.u32 %s555_s21, 3 }
 0x14a   : > { %2102 = dma.done.wait (%p3138_p7), %s528_s16, 128  }
 0x14b   : > { %2104 = vsyncadd (%p3138_p7), %s528_s16, 4294967168 }
 0x14c   : > { %2106 = dma.done.wait (%p3138_p7), %s537_s10, 128  }
 0x14d   : > { %2108 = vsyncadd (%p3138_p7), %s537_s10, 4294967168  ;;  %s3139_s29 = sld [smem:[#allocation33_spill]]  ;;  %s3140_s4 = sld [smem:[#allocation36_spill]] }
 0x153   : > { %s2761_s9 = sand.u32 1, %s3139_s29   ;;  %p1388_p0 = scmp.ne.s32.totalorder %s3140_s4, 0 }
 0x154   : > { %s1384_s18 = sshll.u32 %s2761_s9, 3  ;;  %s1386_s8 = sshll.u32 %s2761_s9, 2  ;;  %v668_v0 = vld [vmem:[%s531_s27] sm:$0xff] (!%p1388_p0)  ;;  %vm672_vm0 = vcmask (!%p1388_p0), 261120   ;;  %v669_v1 = vld [vmem:[%s531_s27 + $0x8] sm:$0xff] (!%p1388_p0) }
 0x155   : > { %s2765_s21 = scalar_lea.vmem [#allocation15], %s1384_s18  ;;  %s2767_s26 = scalar_lea.vmem [#allocation16], %s1384_s18  ;;  %v673_v2 = vsel (!%p1388_p0), %vm672_vm0, %v668_v0, 0.0  ;;  %v676_v3 = vsel (!%p1388_p0), %vm672_vm0, %v669_v1, 0.0  ;;  %v1389_v22 = vld [vmem:[#allocation8] ss:$0 sm:$0xff] (!%p1388_p0) }
 0x156   : > { %s2769_s16 = scalar_lea.vmem [#allocation18], %s1386_s8  ;;  %s2771_s1 = scalar_lea.vmem [#allocation19], %s1386_s8  ;;  %674 = vadd.xlane.f32.xlu0 (!%p1388_p0), %v673_v2  ;;  %v1390_v26 = vld [vmem:[#allocation9] ss:$0 sm:$0xff] (!%p1388_p0) }
 0x157   : > { %667 = sbr.rel (%p1388_p0) target bundleno = 661 (0x295), region = 88 }
 0x15a   : > { %677 = vadd.xlane.f32.xlu0 (!%p1388_p0), %v676_v3 }
 0x1e3   : > { %v675_v4 = vpop.xlane.xlu0 %674 }
 0x1e4   : > { %v680_v5 = vmul.f32 0.03125, %v675_v4 }
 0x1e6   : > { %v682_v6 = vsub.f32 %v668_v0, %v680_v5 }
 0x1e7   : > { %v678_v7 = vpop.xlane.xlu0 %677 }
 0x1e8   : > { %v681_v8 = vmul.f32 0.03125, %v678_v7  ;;  %v684_v9 = vmul.f32 %v682_v6, %v682_v6 }
 0x1ea   : > { %v683_v10 = vsub.f32 %v669_v1, %v681_v8  ;;  %v686_v11 = vsel %vm672_vm0, %v684_v9, 0.0 }
 0x1eb   : > { %687 = vadd.xlane.f32.xlu1 %v686_v11 }
 0x1ec   : > { %v685_v12 = vmul.f32 %v683_v10, %v683_v10 }
 0x1ee   : > { %v689_v13 = vsel %vm672_vm0, %v685_v12, 0.0 }
 0x1ef   : > { %690 = vadd.xlane.f32.xlu1 %v689_v13 }
 0x278   : > { %v688_v14 = vpop.xlane.xlu1 %687 }
 0x279   : > { %v692_v15 = vmul.f32 0.03125, %v688_v14 }
 0x27b   : > { %v694_v16 = vadd.f32 1e-05, %v692_v15 }
 0x27c   : > { %v691_v17 = vpop.xlane.xlu1 %690 }
 0x27d   : > { %1663 = vrsqrt.f32 %v694_v16  ;;  %v693_v18 = vmul.f32 0.03125, %v691_v17 }
 0x27f   : > { %v695_v19 = vadd.f32 1e-05, %v693_v18 }
 0x281   : > { %1665 = vrsqrt.f32 %v695_v19 }
 0x287   : > { %v1664_v20 = vpop.eup %1663 }
 0x288   : > { %v698_v21 = vmul.f32 %v1664_v20, %v682_v6 }
 0x28a   : > { %v706_v24 = vmul.f32 %v1389_v22, %v698_v21 }
 0x28b   : > { %v1666_v23 = vpop.eup %1665 }
 0x28c   : > { %v699_v25 = vmul.f32 %v1666_v23, %v683_v10  ;;  %v714_v28 = vadd.f32 %v1390_v26, %v706_v24 }
 0x28e   : > { %v707_v27 = vmul.f32 %v1389_v22, %v699_v25 }
 0x290   : > { %v715_v29 = vadd.f32 %v1390_v26, %v707_v27 }
 0x292   : > { %v716_v30 = vpack.c.bf16 %v715_v29, %v714_v28 }
 0x294   : > { %717 = vst.msk [vmem:[#allocation2] sm:$0xff] %vm672_vm0, %v716_v30 }
 0x295 PF: > { %v1667_v31 = vld [vmem:[%s557_s13] sm:$0xff]   ;;  %v2189_v32 = vmov 0.0   ;;  %v1669_v34 = vld [vmem:[%s557_s13 + $0x8] sm:$0xff]   ;;  %vm2190_vm1 = vmmov 0   ;;  %vm737_vm2 = vcmask 261120   ;;  %s3141_s23 = scalar_lea.vmem [#allocation13], %s2748_s0 }
 0x296   : > { %1440 = vmatprep.subr.bf16.mxu0 %v2189_v32  ;;  %1448 = vmatprep.subr.bf16.mxu1 %v2189_v32  ;;  %v1668_v33 = vld [vmem:[%s566_s14] sm:$0xff]   ;;  %v1670_v35 = vld [vmem:[%s566_s14 + $0x8] sm:$0xff]   ;;  %s3142_s27 = sld [smem:[#allocation36_spill]]  ;;  %s3143_s10 = sld [smem:[#allocation37_spill]]  ;;  %vm868_vm3 = vcmask 130048   ;;  %vm790_vm4 = vcmask 60416  }
 0x297   : > { %1441 = vmatpush3.bf16.msra.mxu0 %v1667_v31  ;;  %1444 = vmatprep.mubr.msk.bf16.mxu0 %vm2190_vm1, %v2189_v32  ;;  %v1671_v37 = vld [vmem:[%s3141_s23] sm:$0xff]   ;;  %s3144_s15 = scalar_lea.vmem [#allocation14], %s2748_s0  ;;  %s3145_s11 = scalar_lea.vmem [#allocation6], %s2719_s12 }
 0x298   : > { %1449 = vmatpush3.bf16.msra.mxu1 %v1668_v33  ;;  %1442 = vmatprep.subr.bf16.mxu0 %v2189_v32  ;;  %v1672_v38 = vld [vmem:[%s3144_s15] sm:$0xff]   ;;  %s1013_s18 = sshll.u32 %s2767_s26, 4  ;;  %s995_s12 = sshll.u32 %s2765_s21, 4  ;;  %s2821_s12 = int_to_ptr.vmem [resolvable:$true] %s995_s12  ;;  %s2825_s18 = int_to_ptr.vmem [resolvable:$true] %s1013_s18 }
 0x299   : > { %1450 = vmatprep.subr.bf16.mxu1 %v2189_v32  ;;  %1452 = vmatprep.mubr.msk.bf16.mxu1 %vm2190_vm1, %v2189_v32  ;;  %v719_v39 = vld [vmem:[%s3145_s11] sm:$0xff] }
 0x29a   : > { %v720_v40 = vpack.c.bf16 %v719_v39, %v719_v39 }
 0x29b   : > { %1443 = vmatpush3.bf16.msra.mxu0 %v1669_v34  ;;  %v718_v36 = vld [vmem:[#allocation2] sm:$0xff] }
 0x29c   : > { %1451 = vmatpush3.bf16.msra.mxu1 %v1670_v35  ;;  %1456 = vmatprep.subr.bf16.mxu0 %v2189_v32  ;;  %s1409_s13 = sshll.u32 %s3142_s27, 1  ;;  %s1410_s14 = sshll.u32 %s3143_s10, 3 }
 0x29d   : > { %1462 = vmatprep.subr.bf16.mxu1 %v2189_v32  ;;  %s992_s0 = sadd.s32 %s1410_s14, %s1409_s13  ;;  %s1415_s29 = sshll.u32 %s3143_s10, 2 }
 0x29e   : > { %1445 = vmatmul.mubr.msk.bf16.vlgmr.msra.gmra.mrb[0].mxu0 %vm737_vm2, %v718_v36  ;;  %s1411_s4 = sshll.u32 %s992_s0, 6  ;;  %s2807_s8 = sadd.s32 %s3142_s27, %s1415_s29 }
 0x29f   : > { %1453 = vmatmul.mubr.msk.bf16.vlgmr.msra.gmra.mrb[0].mxu1 %vm737_vm2, %v718_v36  ;;  %1457 = vmatpush3.bf16.msra.mxu0 %v1671_v37  ;;  %s3146_s10 = sld [smem:[#allocation55_spill]]  ;;  %s3147_s27 = sld [smem:[#allocation42_spill]] }
 0x2a0   : > { %1463 = vmatpush3.bf16.msra.mxu1 %v1672_v38  ;;  %1458 = vmatprep.mubr.msk.bf16.mxu0 %vm2190_vm1, %v2189_v32  ;;  %s3148_s0 = sld [smem:[#allocation54_spill]]  ;;  %s1416_s23 = sshll.u32 %s2807_s8, 6 }
 0x2a1   : > { %1464 = vmatprep.mubr.msk.bf16.mxu1 %vm2190_vm1, %v2189_v32  ;;  %s1909_s13 = scalar_lea.vmem %s2821_s12, 128  ;;  %s2191_s14 = smov [#allocation15]  }
 0x2a2   : > { %p1910_p13 = scmp.ne.s32.totalorder %s2821_s12, %s1909_s13  ;;  %s1913_s5 = sshll.u32 %s2191_s14, 4  ;;  %s1914_s5 = int_to_ptr.vmem [resolvable:$false] %s1913_s5 }
 0x2a3   : > { %s1915_s6 = scalar_lea.vmem %s1914_s5, 256  ;;  %p1916_p11 = scmp.lt.s32.totalorder %s2821_s12, %s1914_s5 }
 0x2a4   : > { %p1917_p5 = scmp.lt.s32.totalorder %s1915_s6, %s1909_s13 }
 0x2a5   : > { %s2812_s11 = scalar_lea.hbm %s3146_s10, %s1411_s4  ;;  %p3149_p1 = scmp.ne.s32.totalorder %s3147_s27, 0 }
 0x2a6   : > { %1459 = vmatmul.mubr.msk.bf16.vlgmr.msra.gmra.mrb[4].mxu0 %vm868_vm3, %v720_v40  ;;  %s2819_s29 = scalar_lea.hbm %s3148_s0, %s1411_s4  ;;  %s965_s4 = scalar_lea.sflag [#allocation5], %s2761_s9 }
 0x2a7   : > { %1465 = vmatmul.mubr.msk.bf16.vlgmr.msra.gmra.mrb[4].mxu1 %vm868_vm3, %v720_v40  ;;  %p1911_p9 = pnand %p1910_p13, %p3149_p1  ;;  %p1918_p3 = por %p1917_p5, %p1916_p11 }
 0x2a9   : > { %p1912_p2 = pneg %p1911_p9 }
 0x2ab   : > { %p1919_p8 = pnand %p1918_p3, %p1912_p2 }
 0x371   : > { %v775_v41 = vpop.f32.mrb[0].mxu0 }
 0x372   : > { %v1426_v42 = vpack.c.bf16 %v775_v41, %v775_v41  ;;  %v843_v43 = vpop.f32.mrb[0].mxu1  ;;  %v1446_v44 = vpop.f32.mrb[1].mxu0 }
 0x373   : > { %v1428_v45 = vpack.c.bf16 %v843_v43, %v843_v43  ;;  %v1454_v46 = vpop.f32.mrb[1].mxu1  ;;  %v778_v47 = vpop.f32.mrb[2].mxu0 }
 0x374   : > { %791 = vst.msk [vmem:[%s2765_s21] sm:$0xf] %vm790_vm4, %v1426_v42  ;;  %v1427_v48 = vpack.c.bf16 %v778_v47, %v778_v47  ;;  %v846_v49 = vpop.f32.mrb[2].mxu1  ;;  %v1447_v50 = vpop.f32.mrb[3].mxu0 }
 0x375   : > { %858 = vst.msk [vmem:[%s2767_s26] sm:$0xf] %vm790_vm4, %v1428_v45  ;;  %v1429_v51 = vpack.c.bf16 %v846_v49, %v846_v49  ;;  %v1455_v52 = vpop.f32.mrb[3].mxu1 }
 0x376   : > { %792 = vst.msk [vmem:[%s2765_s21 + $0x4] sm:$0xf] %vm790_vm4, %v1427_v48 }
 0x377   : > { %859 = vst.msk [vmem:[%s2767_s26 + $0x4] sm:$0xf] %vm790_vm4, %v1429_v51 }
 0x378   : > { %1922 = shalt.err (!%p1919_p8)
}
 0x379   : > { %s1923_s26 = scalar_lea.hbm %s2819_s29, 128  ;;  %s1927_s14 = scalar_lea.hbm %s3148_s0, 1024 }
 0x37a   : > { %p1924_p10 = scmp.ne.s32.totalorder %s2819_s29, %s1923_s26  ;;  %p1928_p12 = scmp.lt.u32.totalorder %s2819_s29, %s3148_s0 }
 0x37b   : > { %p1929_p7 = scmp.lt.u32.totalorder %s1927_s14, %s1923_s26  ;;  %p1931_p13 = scmp.lt.u32.totalorder %s1923_s26, %s2819_s29 }
 0x37c   : > { %p1925_p6 = pnand %p1924_p10, %p3149_p1 }
 0x37d   : > { %p1930_p0 = por %p1929_p7, %p1928_p12 }
 0x37e   : > { %p1926_p4 = pneg %p1925_p6 }
 0x37f   : > { %p1932_p9 = por %p1931_p13, %p1930_p0 }
 0x381   : > { %p1933_p2 = pnand %p1932_p9, %p1926_p4 }
 0x383   : > { %1936 = shalt.err (!%p1933_p2)
}
 0x384   : > { %s2192_s6 = smov 64   ;;  %s2193_s3 = smov 4  }
 0x385   : > { %1488 = dma.vmem_to_hbm [thread:$0]  (%p3149_p1), %s2821_s12, 128, %s2819_s29, %s965_s4, %s2192_s6, %s2192_s6, %s2193_s3  }
 0x386   : > { %s970_s15 = scalar_lea.sflag [#allocation17], %s2708_s20  ;;  %s1937_s13 = scalar_lea.vmem %s2825_s18, 128 }
 0x387   : > { %p1938_p11 = scmp.ne.s32.totalorder %s2825_s18, %s1937_s13  ;;  %s2194_s26 = smov [#allocation16]  }
 0x388   : > { %s1941_s21 = sshll.u32 %s2194_s26, 4  ;;  %s1942_s21 = int_to_ptr.vmem [resolvable:$false] %s1941_s21 }
 0x389   : > { %p1939_p5 = pnand %p1938_p11, %p3149_p1  ;;  %s1943_s14 = scalar_lea.vmem %s1942_s21, 256 }
 0x38a   : > { %p1944_p8 = scmp.lt.s32.totalorder %s2825_s18, %s1942_s21  ;;  %p1945_p10 = scmp.lt.s32.totalorder %s1943_s14, %s1937_s13 }
 0x38b   : > { %p1940_p3 = pneg %p1939_p5 }
 0x38c   : > { %p1946_p6 = por %p1945_p10, %p1944_p8 }
 0x38e   : > { %p1947_p4 = pnand %p1946_p6, %p1940_p3 }
 0x390   : > { %1950 = shalt.err (!%p1947_p4)
}
 0x391   : > { %s1951_s12 = scalar_lea.hbm %s2812_s11, 128  ;;  %s1955_s5 = scalar_lea.hbm %s3146_s10, 1024 }
 0x392   : > { %p1952_p12 = scmp.ne.s32.totalorder %s2812_s11, %s1951_s12  ;;  %p1956_p13 = scmp.lt.u32.totalorder %s2812_s11, %s3146_s10 }
 0x393   : > { %p1957_p9 = scmp.lt.u32.totalorder %s1955_s5, %s1951_s12  ;;  %p1959_p11 = scmp.lt.u32.totalorder %s1951_s12, %s2812_s11 }
 0x394   : > { %p1953_p7 = pnand %p1952_p12, %p3149_p1 }
 0x395   : > { %p1958_p2 = por %p1957_p9, %p1956_p13 }
 0x396   : > { %p1954_p0 = pneg %p1953_p7 }
 0x397   : > { %p1960_p5 = por %p1959_p11, %p1958_p2 }
 0x399   : > { %p1961_p3 = pnand %p1960_p5, %p1954_p0 }
 0x39b   : > { %1964 = shalt.err (!%p1961_p3)
}
 0x39c   : > { %1489 = dma.vmem_to_hbm [thread:$0]  (%p3149_p1), %s2825_s18, 128, %s2812_s11, %s970_s15, %s2192_s6, %s2192_s6, %s2193_s3   ;;  %v906_v53 = vpop.f32.mrb[4].mxu0  ;;  %v956_v55 = vpop.f32.mrb[4].mxu1 }
 0x39d   : > { %s3150_s12 = sld [smem:[#allocation56_spill]]  ;;  %v912_v54 = vpack.c.bf16 %v906_v53, %v906_v53  ;;  %v1460_v56 = vpop.f32.mrb[5].mxu0  ;;  %s3151_s4 = sshll.u32 %s2769_s16, 4  ;;  %v962_v57 = vpack.c.bf16 %v956_v55, %v956_v55  ;;  %v1466_v58 = vpop.f32.mrb[5].mxu1  ;;  %s2897_s4 = int_to_ptr.vmem [resolvable:$true] %s3151_s4 }
 0x39e   : > { %v909_v59 = vpop.f32.mrb[6].mxu0  ;;  %s3152_s6 = sld [smem:[#allocation57_spill]]  ;;  %s3153_s5 = sshll.u32 %s2771_s1, 4  ;;  %v959_v60 = vpop.f32.mrb[6].mxu1  ;;  %s2908_s5 = int_to_ptr.vmem [resolvable:$true] %s3153_s5 }
 0x39f   : > { %913 = vst.msk [vmem:[%s2769_s16] sm:$0xf] %vm790_vm4, %v912_v54  ;;  %v1461_v61 = vpop.f32.mrb[7].mxu0  ;;  %963 = vst.msk [vmem:[%s2771_s1] sm:$0xf] %vm790_vm4, %v962_v57  ;;  %v1467_v62 = vpop.f32.mrb[7].mxu1 }
 0x3a0   : > { %s1965_s26 = scalar_lea.vmem %s2897_s4, 64  ;;  %s2195_s8 = smov [#allocation18]  }
 0x3a1   : > { %p1966_p8 = scmp.ne.s32.totalorder %s2897_s4, %s1965_s26  ;;  %s1969_s21 = sshll.u32 %s2195_s8, 4  ;;  %s1970_s21 = int_to_ptr.vmem [resolvable:$false] %s1969_s21 }
 0x3a2   : > { %p1972_p4 = scmp.lt.s32.totalorder %s2897_s4, %s1970_s21 }
 0x3a3   : > { %s2893_s29 = scalar_lea.hbm %s3150_s12, %s1416_s23  ;;  %p1967_p10 = pnand %p1966_p8, %p3149_p1 }
 0x3a4   : > { %s2904_s3 = scalar_lea.hbm %s3152_s6, %s1416_s23  ;;  %s1971_s23 = scalar_lea.vmem %s1970_s21, 128 }
 0x3a5   : > { %p1968_p6 = pneg %p1967_p10  ;;  %p1973_p12 = scmp.lt.s32.totalorder %s1971_s23, %s1965_s26 }
 0x3a7   : > { %p1974_p7 = por %p1973_p12, %p1972_p4 }
 0x3a9   : > { %p1975_p0 = pnand %p1974_p7, %p1968_p6 }
 0x3ab   : > { %1978 = shalt.err (!%p1975_p0)
}
 0x3ac   : > { %s1979_s1 = scalar_lea.hbm %s2893_s29, 64  ;;  %s1983_s14 = scalar_lea.hbm %s3150_s12, 512 }
 0x3ad   : > { %p1980_p13 = scmp.ne.s32.totalorder %s2893_s29, %s1979_s1  ;;  %p1984_p11 = scmp.lt.u32.totalorder %s2893_s29, %s3150_s12 }
 0x3ae   : > { %p1985_p5 = scmp.lt.u32.totalorder %s1983_s14, %s1979_s1  ;;  %p1987_p8 = scmp.lt.u32.totalorder %s1979_s1, %s2893_s29 }
 0x3af   : > { %p1981_p9 = pnand %p1980_p13, %p3149_p1 }
 0x3b0   : > { %p1986_p3 = por %p1985_p5, %p1984_p11 }
 0x3b1   : > { %p1982_p2 = pneg %p1981_p9 }
 0x3b2   : > { %p1988_p10 = por %p1987_p8, %p1986_p3 }
 0x3b4   : > { %p1989_p6 = pnand %p1988_p10, %p1982_p2 }
 0x3b6   : > { %1992 = shalt.err (!%p1989_p6)
}
 0x3b7   : > { %1490 = dma.vmem_to_hbm [thread:$0]  (%p3149_p1), %s2897_s4, 64, %s2893_s29, %s970_s15  }
 0x3b8   : > { %s980_s26 = scalar_lea.sflag [#allocation20], %s2761_s9  ;;  %s1993_s8 = scalar_lea.vmem %s2908_s5, 64 }
 0x3b9   : > { %p1994_p4 = scmp.ne.s32.totalorder %s2908_s5, %s1993_s8  ;;  %s2196_s21 = smov [#allocation19]  }
 0x3ba   : > { %s1997_s23 = sshll.u32 %s2196_s21, 4  ;;  %s1998_s23 = int_to_ptr.vmem [resolvable:$false] %s1997_s23 }
 0x3bb   : > { %p1995_p12 = pnand %p1994_p4, %p3149_p1  ;;  %s1999_s1 = scalar_lea.vmem %s1998_s23, 128 }
 0x3bc   : > { %p2000_p0 = scmp.lt.s32.totalorder %s2908_s5, %s1998_s23  ;;  %p2001_p13 = scmp.lt.s32.totalorder %s1999_s1, %s1993_s8 }
 0x3bd   : > { %p1996_p7 = pneg %p1995_p12 }
 0x3be   : > { %p2002_p9 = por %p2001_p13, %p2000_p0 }
 0x3c0   : > { %p2003_p2 = pnand %p2002_p9, %p1996_p7 }
 0x3c2   : > { %2006 = shalt.err (!%p2003_p2)
}
 0x3c3   : > { %s2007_s20 = scalar_lea.hbm %s2904_s3, 64  ;;  %s2011_s29 = scalar_lea.hbm %s3152_s6, 512 }
 0x3c4   : > { %p2008_p11 = scmp.ne.s32.totalorder %s2904_s3, %s2007_s20  ;;  %p2012_p8 = scmp.lt.u32.totalorder %s2904_s3, %s3152_s6 }
 0x3c5   : > { %p2013_p10 = scmp.lt.u32.totalorder %s2011_s29, %s2007_s20  ;;  %p2015_p4 = scmp.lt.u32.totalorder %s2007_s20, %s2904_s3 }
 0x3c6   : > { %p2009_p5 = pnand %p2008_p11, %p3149_p1 }
 0x3c7   : > { %p2014_p6 = por %p2013_p10, %p2012_p8 }
 0x3c8   : > { %p2010_p3 = pneg %p2009_p5 }
 0x3c9   : > { %p2016_p12 = por %p2015_p4, %p2014_p6 }
 0x3cb   : > { %p2017_p7 = pnand %p2016_p12, %p2010_p3 }
 0x3cd   : > { %2020 = shalt.err (!%p2017_p7)
}
 0x3ce   : > { %1491 = dma.vmem_to_hbm [thread:$0]  (%p3149_p1), %s2908_s5, 64, %s2904_s3, %s980_s26  }
 0x3cf PF: > { %s3154_s13 = sld [smem:[#allocation32_spill]]  ;;  %s3155_s14 = sld [smem:[#allocation43_spill]] }
 0x3d0   : > { %p1540_p0 = scmp.ge.s32.totalorder %s2175_s30, 2 }
 0x3d5   : > { %s1058_s18 = sand.u32 1, %s3154_s13   ;;  %p3156_p13 = scmp.ne.s32.totalorder %s3155_s14, 0 }
 0x3d6   : > { %s1059_s11 = scalar_lea.sflag [#allocation5], %s1058_s18 }
 0x3d7   : > { %p1523_p9 = pnand %p1540_p0, %p3156_p13 }
 0x3d9   : > { %2110 = dma.done.wait (!%p1523_p9), %s1059_s11, 128  }
 0x3da   : > { %2112 = vsyncadd (!%p1523_p9), %s1059_s11, 4294967168  ;;  %s3157_s8 = sadd.s32 4294967294, %s2175_s30  }
 0x3db   : > { %s1067_s21 = sand.u32 1, %s3157_s8  }
 0x3dc   : > { %s1068_s23 = scalar_lea.sflag [#allocation17], %s1067_s21 }
 0x3dd   : > { %2114 = dma.done.wait (!%p1523_p9), %s1068_s23, 192  }
 0x3de   : > { %2116 = vsyncadd (!%p1523_p9), %s1068_s23, 4294967104  ;;  %s1086_s27 = scalar_lea.sflag [#allocation20], %s1058_s18 }
 0x3df   : > { %2118 = dma.done.wait (!%p1523_p9), %s1086_s27, 64  }
 0x3e0   : > { %2120 = vsyncadd (!%p1523_p9), %s1086_s27, 4294967232  ;;  %s38_s30 = sadd.s32 1, %s2175_s30   ;;  %s3159_s5 = sld [smem:[#allocation33_spill]] }
 0x3e1   : > { %p2966_p1 = scmp.ge.s32.totalorder %s38_s30, 10   ;;  %s3160_s26 = smov %s2539_s17 }
 0x3e2   : > { %s3161_s20 = sld [smem:[#allocation34_spill]]  ;;  %s3162_s23 = sld [smem:[#allocation35_spill]] }
 0x3e3   : > { %s3163_s27 = sld [smem:[#allocation38_spill]]  ;;  %s3164_s1 = sld [smem:[#allocation45_spill]] }
 0x3e4   : > { %s3165_s29 = sld [smem:[#allocation46_spill]]  ;;  %s3167_s18 = smov %s2131_s19 }
 0x3e5   : > { %s3168_s19 = smov %s3160_s26  ;;  %s3169_s21 = smov %s2143_s22 }
 0x3e6   : > { %s3166_s17 = smov %s3159_s5  ;;  %s3170_s22 = smov %s2525_s24 }
 0x3e7   : > { %s3171_s24 = smov %s2155_s25  ;;  %s3172_s25 = smov %s2534_s2 }
 0x3e8   : > { %s3173_s26 = smov %s2167_s28  ;;  %37 = sbr.rel (!%p2966_p1) target bundleno = 29 (0x1d), region = 215 }
 0x3e9   : > { %s3174_s28 = smov %s3164_s1 }
 0x3ef   :  { %1091 = vsyncpa [#allocation4], 1 }
 0x3f0   :  { %1093 = vsyncpa [#allocation4 + $0x1], 1 }
 0x3f1   :  { %1094 = vsyncpa [#allocation7], 1 }
 0x3f2   :  { %1096 = vsyncpa [#allocation7 + $0x1], 1 }
 0x3f3   :  { %1097 = vsyncpa [#allocation10], 1 }
 0x3f4   :  { %1098 = vsyncpa [#allocation5], 1 }
 0x3f5   :  { %1100 = vsyncpa [#allocation5 + $0x1], 1 }
 0x3f6   :  { %1101 = vsyncpa [#allocation17], 1 }
 0x3f7   :  { %1103 = vsyncpa [#allocation17 + $0x1], 1 }
 0x3f8   :  { %1104 = vsyncpa [#allocation20], 1 }
 0x3f9   :  { %1106 = vsyncpa [#allocation20 + $0x1], 1 }

// kernel: tpu_custom_call.1
= control target key start
LH: loop header
LB: loop body
LE: loop exit
PB: predicated region body
PF: predicated region fallthrough
CT: control target
= control target key end

     0   :  { %s3013_s0 = inlined_call_operand.hbm [shape: f32[2,16,32], index: 0, kind: input, shape index: {}]   ;;  %s3014_s1 = inlined_call_operand.hbm [shape: f32[2,8,16], index: 1, kind: input, shape index: {}]   ;;  %s3015_s2 = inlined_call_operand.hbm [shape: f32[1,32], index: 2, kind: input, shape index: {}]   ;;  %s3016_s3 = inlined_call_operand.hbm [shape: f32[1,32], index: 3, kind: input, shape index: {}]   ;;  %s3017_s4 = inlined_call_operand.hbm [shape: bf16[4,32,8], index: 4, kind: input, shape index: {}]   ;;  %s3018_s5 = inlined_call_operand.hbm [shape: bf16[4,32,8], index: 5, kind: input, shape index: {}]   ;;  %s3019_s6 = inlined_call_operand.hbm [shape: bf16[4,16,8], index: 6, kind: input, shape index: {}]   ;;  %s3020_s7 = inlined_call_operand.hbm [shape: bf16[4,16,8], index: 7, kind: input, shape index: {}]   ;;  %s3021_s8 = inlined_call_operand.hbm [shape: bf16[2,4,16,8], index: 8, kind: output, shape index: {0}]   ;;  %s3022_s9 = inlined_call_operand.hbm [shape: bf16[2,4,16,8], index: 9, kind: output, shape index: {1}]   ;;  %s3023_s10 = inlined_call_operand.hbm [shape: bf16[2,4,8,8], index: 10, kind: output, shape index: {2}]   ;;  %s3024_s11 = inlined_call_operand.hbm [shape: bf16[2,4,8,8], index: 11, kind: output, shape index: {3}]  }
   0x1   :  { %3066 = sst [smem:[#allocation47_spill]] %s3013_s0 }
   0x2   :  { %3067 = sst [smem:[#allocation48_spill]] %s3014_s1 }
   0x3   :  { %3068 = sst [smem:[#allocation49_spill]] %s3015_s2 }
   0x4   :  { %3069 = sst [smem:[#allocation50_spill]] %s3016_s3 }
   0x5   :  { %3070 = sst [smem:[#allocation51_spill]] %s3017_s4 }
   0x6   :  { %3071 = sst [smem:[#allocation52_spill]] %s3018_s5 }
   0x7   :  { %3072 = sst [smem:[#allocation53_spill]] %s3019_s6 }
   0x8   :  { %3073 = sst [smem:[#allocation54_spill]] %s3021_s8 }
   0x9   :  { %3074 = sst [smem:[#allocation55_spill]] %s3022_s9 }
   0xa   :  { %3075 = sst [smem:[#allocation56_spill]] %s3023_s10 }
   0xb   :  { %3076 = sst [smem:[#allocation57_spill]] %s3024_s11 }
   0xc   :  { %17 = vsyncpa [#allocation4], 0 }
   0xd   :  { %19 = vsyncpa [#allocation4 + $0x1], 0 }
   0xe   :  { %20 = vsyncpa [#allocation7], 0 }
   0xf   :  { %22 = vsyncpa [#allocation7 + $0x1], 0 }
  0x10   :  { %23 = vsyncpa [#allocation10], 0 }
  0x11   :  { %24 = vsyncpa [#allocation5], 0 }
  0x12   :  { %26 = vsyncpa [#allocation5 + $0x1], 0 }
  0x13   :  { %27 = vsyncpa [#allocation17], 0 }
  0x14   :  { %29 = vsyncpa [#allocation17 + $0x1], 0 }
  0x15   :  { %30 = vsyncpa [#allocation20], 0 }
  0x16   :  { %32 = vsyncpa [#allocation20 + $0x1], 0  ;;  %s2257_s17 = smov 0   ;;  %s2259_s18 = smov 0  }
  0x17   :  { %s2261_s19 = smov 0   ;;  %s2263_s20 = smov 0  }
  0x18   :  { %s2265_s21 = smov 0   ;;  %s2267_s22 = smov 0  }
  0x19   :  { %s2269_s23 = smov 0   ;;  %s2271_s24 = smov 0  }
  0x1a   :  { %s2273_s25 = smov 0   ;;  %s2275_s26 = smov 0  }
  0x1b   :  { %s2277_s27 = smov 0   ;;  %s2279_s28 = smov 0  }
  0x1c   :  { %s2281_s29 = smov 0   ;;  %s2283_s30 = smov 0  }
  0x1d LB: > { %3077 = sst [smem:[#allocation32_spill]] %s2123_s17  ;;  %s2324_s12 = sadd.s32 4294967295, %s2175_s30   ;;  %s2175_s30 = sphi %s2283_s30, %s38_s30   ;;  %s2171_s29 = sphi %s2281_s29, %s3165_s29   ;;  %s2167_s28 = sphi %s2279_s28, %s3174_s28   ;;  %s2163_s27 = sphi %s2277_s27, %s3163_s27   ;;  %s2159_s26 = sphi %s2275_s26, %s3173_s26   ;;  %s2155_s25 = sphi %s2273_s25, %s3172_s25   ;;  %s2151_s24 = sphi %s2271_s24, %s3171_s24   ;;  %s2147_s23 = sphi %s2269_s23, %s3162_s23   ;;  %s2143_s22 = sphi %s2267_s22, %s3170_s22   ;;  %s2139_s21 = sphi %s2265_s21, %s3169_s21   ;;  %s2135_s20 = sphi %s2263_s20, %s3161_s20   ;;  %s2131_s19 = sphi %s2261_s19, %s3168_s19   ;;  %s2127_s18 = sphi %s2259_s18, %s3167_s18   ;;  %s2123_s17 = sphi %s2257_s17, %s3166_s17  }
  0x1e   : > { %3078 = sst [smem:[#allocation33_spill]] %s2127_s18  ;;  %s3029_s13 = sadd.s32 4294967294, %s2175_s30  }
  0x1f   : > { %3079 = sst [smem:[#allocation34_spill]] %s2139_s21  ;;  %p3028_p0 = scmp.eq.s32.totalorder %s2175_s30, 0 }
  0x20   : > { %3080 = sst [smem:[#allocation35_spill]] %s2151_s24  ;;  %p70_p1 = scmp.ne.s32.totalorder %s2151_s24, %s2147_s23 }
  0x21   : > { %3081 = sst [smem:[#allocation36_spill]] %s2159_s26  ;;  %p3040_p2 = scmp.eq.s32.totalorder %s2324_s12, 0 }
  0x22   : > { %3082 = sst [smem:[#allocation37_spill]] %s2163_s27  ;;  %p158_p3 = scmp.ne.s32.totalorder %s2143_s22, %s2139_s21 }
  0x23   : > { %3083 = sst [smem:[#allocation38_spill]] %s2171_s29  ;;  %p164_p4 = scmp.ne.s32.totalorder %s2139_s21, %s2135_s20 }
  0x24   : > { %3084 = sst [smem:[#allocation39_spill]] %s2324_s12  ;;  %p2336_p5 = por %p3040_p2, %p70_p1 }
  0x25   : > { %p2343_p6 = por %p158_p3, %p3028_p0  ;;  %p2349_p7 = por %p164_p4, %p3040_p2 }
  0x26   : > { %s3085_s15 = scalar_select %p2336_p5, 1, 0 }
  0x27   : > { %s3087_s11 = scalar_select %p2343_p6, 1, 0 }
  0x28   : > { %3086 = sst [smem:[#allocation40_spill]] %s3085_s15  ;;  %p267_p8 = scmp.ne.s32.totalorder %s2131_s19, %s2127_s18 }
  0x29   : > { %s3088_s23 = scalar_select %p2349_p7, 1, 0 }
  0x2a   : > { %p268_p9 = scmp.eq.s32.totalorder %s2324_s12, 7  ;;  %p273_p10 = scmp.ne.s32.totalorder %s2127_s18, %s2123_s17 }
  0x2b   : > { %3089 = sst [smem:[#allocation41_spill]] %s3088_s23  ;;  %p274_p11 = scmp.eq.s32.totalorder %s3029_s13, 7 }
  0x2c   : > { %p2360_p12 = por %p268_p9, %p267_p8  ;;  %p1354_p13 = scmp.ge.s32.totalorder %s2175_s30, 1 }
  0x2d   : > { %p2365_p1 = por %p274_p11, %p273_p10  ;;  %p365_p3 = scmp.lt.s32.totalorder %s2175_s30, 9 }
  0x2e   : > { %s3090_s20 = scalar_select %p2360_p12, 1, 0 }
  0x2f   : > { %s3092_s16 = scalar_select %p2365_p1, 1, 0 }
  0x30   : > { %3091 = sst [smem:[#allocation42_spill]] %s3090_s20  ;;  %p2370_p4 = pnand %p1354_p13, %p365_p3 }
  0x31   : > { %3093 = sst [smem:[#allocation43_spill]] %s3092_s16  ;;  %s2177_s10 = smov [#allocation8]  }
  0x32   : > { %s3094_s14 = scalar_select %p2370_p4, 1, 0 }
  0x33   : > { %s378_s8 = sshll.u32 %s2177_s10, 4  ;;  %p1496_p0 = pneg %p2370_p4  ;;  %s379_s8 = int_to_ptr.vmem [resolvable:$true] %s378_s8 }
  0x34   : > { %3095 = sst [smem:[#allocation44_spill]] %s3094_s14  ;;  %s3097_s2 = sld [smem:[#allocation49_spill]] }
  0x35   : > { %p2378_p8 = pnand %p1496_p0, %p3040_p2 }
  0x37   : > { %s3096_s13 = scalar_select %p2378_p8, 1, 0 }
  0x38   : > { %p3047_p11 = pneg %p2378_p8 }
  0x3a   : > { %s1673_s27 = scalar_lea.hbm %s3097_s2, 16 }
  0x3b   : > { %p1674_p10 = scmp.ne.s32.totalorder %s3097_s2, %s1673_s27  ;;  %p1680_p3 = scmp.lt.u32.totalorder %s1673_s27, %s3097_s2 }
  0x3d   : > { %p1676_p0 = pnand %p3047_p11, %p1674_p10 }
  0x3f   : > { %p1677_p13 = pneg %p1676_p0 }
  0x41   : > { %p1682_p2 = pnand %p1680_p3, %p1677_p13 }
  0x43   : > { %1685 = shalt.err (!%p1682_p2)
}
  0x44   : > { %s1686_s16 = scalar_lea.vmem %s379_s8, 16  ;;  %s1693_s9 = scalar_lea.vmem %s379_s8, 32 }
  0x45   : > { %p1687_p9 = scmp.ne.s32.totalorder %s379_s8, %s1686_s16  ;;  %p1694_p7 = scmp.lt.s32.totalorder %s379_s8, %s379_s8 }
  0x46   : > { %p1695_p5 = scmp.lt.s32.totalorder %s1693_s9, %s1686_s16 }
  0x47   : > { %p1689_p1 = pnand %p1687_p9, %p3047_p11 }
  0x48   : > { %p1696_p4 = por %p1695_p5, %p1694_p7 }
  0x49   : > { %p1690_p12 = pneg %p1689_p1 }
  0x4b   : > { %p1697_p6 = pnand %p1696_p4, %p1690_p12 }
  0x4d   : > { %1700 = shalt.err (!%p1697_p6)
}
  0x4e   : > { %1499 = dma.hbm_to_vmem [thread:$0]  (!%p2378_p8), %s3097_s2, 16, %s379_s8, [#allocation7]  }
  0x4f   : > { %p3098_p2 = scmp.ne.s32.totalorder %s2155_s25, %s2151_s24  ;;  %p3099_p5 = scmp.eq.s32.totalorder %s2175_s30, 0 }
  0x50   : > { %p1537_p6 = scmp.lt.s32.totalorder %s2175_s30, 8  ;;  %s3046_s27 = sand.u32 1, %s2175_s30  }
  0x51   : > { %p66_p7 = por %p3099_p5, %p3098_p2  ;;  %s3045_s16 = sand.u32 1, %s2155_s25  }
  0x52   : > { %s1358_s23 = sshll.u32 %s3045_s16, 4  ;;  %s1421_s20 = sshll.u32 %s2171_s29, 8 }
  0x53   : > { %s3100_s0 = sld [smem:[#allocation47_spill]]  ;;  %s404_s26 = scalar_lea.vmem [#allocation3], %s1358_s23 }
  0x54   : > { %s411_s8 = sshll.u32 %s404_s26, 4  ;;  %p2426_p12 = pnand %p1537_p6, %p66_p7  ;;  %s2424_s8 = int_to_ptr.vmem [resolvable:$true] %s411_s8 }
  0x55   : > { %p3102_p1 = scmp.ne.s32.totalorder %s3087_s11, 0 }
  0x56   : > { %p1703_p10 = pneg %p2426_p12 }
  0x57   : > { %p2432_p4 = pnand %p1537_p6, %p3102_p1 }
  0x59   : > { %s2422_s18 = scalar_lea.hbm %s3100_s0, %s1421_s20  ;;  %s2438_s20 = scalar_lea.sflag [#allocation4], %s3046_s27 }
  0x5a   : > { %s3103_s16 = scalar_select %p2432_p4, 1, 0 }
  0x5b   : > { %s1701_s10 = scalar_lea.hbm %s2422_s18, 256  ;;  %s1706_s11 = scalar_lea.hbm %s3100_s0, 512 }
  0x5c   : > { %p1702_p9 = scmp.ne.s32.totalorder %s2422_s18, %s1701_s10  ;;  %p1707_p3 = scmp.lt.u32.totalorder %s2422_s18, %s3100_s0 }
  0x5d   : > { %p1708_p2 = scmp.lt.u32.totalorder %s1706_s11, %s1701_s10  ;;  %p1710_p7 = scmp.lt.u32.totalorder %s1701_s10, %s2422_s18 }
  0x5e   : > { %p1704_p0 = pnand %p1703_p10, %p1702_p9 }
  0x5f   : > { %p1709_p5 = por %p1708_p2, %p1707_p3 }
  0x60   : > { %p1705_p13 = pneg %p1704_p0 }
  0x61   : > { %p1711_p6 = por %p1710_p7, %p1709_p5 }
  0x63   : > { %p1712_p1 = pnand %p1711_p6, %p1705_p13 }
  0x65   : > { %1715 = shalt.err (!%p1712_p1)
}
  0x66   : > { %s1716_s27 = scalar_lea.vmem %s2424_s8, 256  ;;  %s2178_s23 = smov [#allocation3]  }
  0x67   : > { %p1717_p9 = scmp.ne.s32.totalorder %s2424_s8, %s1716_s27  ;;  %s1721_s9 = sshll.u32 %s2178_s23, 4  ;;  %s1722_s9 = int_to_ptr.vmem [resolvable:$false] %s1721_s9 }
  0x68   : > { %s1723_s2 = scalar_lea.vmem %s1722_s9, 512  ;;  %p1724_p8 = scmp.lt.s32.totalorder %s2424_s8, %s1722_s9 }
  0x69   : > { %p1719_p0 = pnand %p1717_p9, %p1703_p10  ;;  %p1725_p3 = scmp.lt.s32.totalorder %s1723_s2, %s1716_s27 }
  0x6b   : > { %p1720_p11 = pneg %p1719_p0  ;;  %p1726_p2 = por %p1725_p3, %p1724_p8 }
  0x6d   : > { %p1727_p5 = pnand %p1726_p2, %p1720_p11 }
  0x6f   : > { %1730 = shalt.err (!%p1727_p5)
}
  0x70   : > { %s2179_s10 = smov 128   ;;  %s2180_s11 = smov 8  }
  0x71   : > { %1506 = dma.hbm_to_vmem [thread:$0]  (!%p2426_p12), %s2422_s18, 256, %s2424_s8, %s2438_s20, %s2179_s10, %s2179_s10, %s2180_s11  }
  0x72   : > { %s3104_s26 = sand.u32 1, %s2155_s25   ;;  %s1362_s0 = sshll.u32 %s2171_s29, 7 }
  0x73   : > { %s1361_s23 = sshll.u32 %s3104_s26, 3  ;;  %s3105_s1 = sld [smem:[#allocation48_spill]] }
  0x74   : > { %s425_s21 = scalar_lea.vmem [#allocation6], %s1361_s23  ;;  %s3106_s24 = sand.u32 1, %s2175_s30  }
  0x75   : > { %s432_s15 = sshll.u32 %s425_s21, 4  ;;  %s2476_s12 = scalar_lea.sflag [#allocation7], %s3106_s24  ;;  %s433_s15 = int_to_ptr.vmem [resolvable:$true] %s432_s15 }
  0x79   : > { %s2472_s2 = scalar_lea.hbm %s3105_s1, %s1362_s0  ;;  %s1736_s0 = scalar_lea.hbm %s3105_s1, 256 }
  0x7a   : > { %s1731_s14 = scalar_lea.hbm %s2472_s2, 128  ;;  %p1737_p7 = scmp.lt.u32.totalorder %s2472_s2, %s3105_s1 }
  0x7b   : > { %p1732_p8 = scmp.ne.s32.totalorder %s2472_s2, %s1731_s14  ;;  %p1738_p6 = scmp.lt.u32.totalorder %s1736_s0, %s1731_s14 }
  0x7c   : > { %p1740_p9 = scmp.lt.u32.totalorder %s1731_s14, %s2472_s2 }
  0x7d   : > { %p1734_p11 = pnand %p1732_p8, %p1703_p10  ;;  %p1739_p1 = por %p1738_p6, %p1737_p7 }
  0x7f   : > { %p1735_p13 = pneg %p1734_p11  ;;  %p1741_p0 = por %p1740_p9, %p1739_p1 }
  0x81   : > { %p1742_p3 = pnand %p1741_p0, %p1735_p13 }
  0x83   : > { %1745 = shalt.err (!%p1742_p3)
}
  0x84   : > { %s1746_s21 = scalar_lea.vmem %s433_s15, 128  ;;  %s2181_s24 = smov [#allocation6]  }
  0x85   : > { %p1747_p2 = scmp.ne.s32.totalorder %s433_s15, %s1746_s21  ;;  %s1751_s26 = sshll.u32 %s2181_s24, 4  ;;  %s1752_s26 = int_to_ptr.vmem [resolvable:$false] %s1751_s26 }
  0x86   : > { %s1753_s23 = scalar_lea.vmem %s1752_s26, 256  ;;  %p1754_p11 = scmp.lt.s32.totalorder %s433_s15, %s1752_s26 }
  0x87   : > { %p1749_p5 = pnand %p1747_p2, %p1703_p10  ;;  %p1755_p4 = scmp.lt.s32.totalorder %s1753_s23, %s1746_s21 }
  0x89   : > { %p1750_p8 = pneg %p1749_p5  ;;  %p1756_p6 = por %p1755_p4, %p1754_p11 }
  0x8b   : > { %p1757_p7 = pnand %p1756_p6, %p1750_p8 }
  0x8d   : > { %1760 = shalt.err (!%p1757_p7)
}
  0x8e   : > { %1509 = dma.hbm_to_vmem [thread:$0]  (!%p2426_p12), %s2472_s2, 128, %s433_s15, %s2476_s12  }
  0x8f   : > { %s47_s14 = sadd.s32 1, %s2167_s28  ;;  %s3058_s9 = sand.u32 1, %s2143_s22  }
  0x90   : > { %p48_p4 = scmp.ge.s32.totalorder %s47_s14, 4  ;;  %s2502_s27 = sshll.u32 %s3058_s9, 4 }
  0x91   : > { %s3059_s17 = sshll.u32 %s2167_s28, 8  ;;  %s3108_s18 = sadd.s32 1, %s2171_s29 }
  0x92   : > { %s3176_s14 = smov (%p48_p4, %s47_s14), 0  ;;  %s3178_s18 = smov (!%p48_p4, %s3108_s18), %s2171_s29 }
  0x93   : > { %3107 = sst [smem:[#allocation45_spill]] %s3176_s14  ;;  %s148_s8 = ssub.s32 %s2167_s28, %s3176_s14 }
  0x94   : > { %s3109_s4 = sld [smem:[#allocation51_spill]]  ;;  %p52_p12 = scmp.ge.s32.totalorder %s3178_s18, 2 }
  0x95   : > { %p149_p10 = scmp.eq.s32.totalorder %s148_s8, 0  ;;  %s443_s10 = scalar_lea.vmem [#allocation11], %s2502_s27 }
  0x96   : > { %s450_s11 = sshll.u32 %s443_s10, 4  ;;  %s3180_s18 = smov (%p52_p12, %s3178_s18), 0  ;;  %s2529_s11 = int_to_ptr.vmem [resolvable:$true] %s450_s11 }
  0x97   : > { %3110 = sst [smem:[#allocation46_spill]] %s3180_s18  ;;  %s3111_s21 = sadd.s32 1, %s2143_s22 }
  0x98   : > { %s2525_s24 = scalar_select %p149_p10, %s2143_s22, %s3111_s21  }
  0x99   : > { %s54_s26 = ssub.s32 %s2171_s29, %s3180_s18  ;;  %s3112_s15 = sadd.s32 1, %s2155_s25 }
  0x9a   : > { %s2517_s0 = scalar_lea.hbm %s3109_s4, %s3059_s17  ;;  %p55_p13 = scmp.eq.s32.totalorder %s54_s26, 0 }
  0x9b   : > { %s254_s23 = sor.u32 %s148_s8, %s54_s26  ;;  %s3113_s9 = sadd.s32 1, %s2131_s19 }
  0x9c   : > { %p255_p1 = scmp.eq.s32.totalorder %s254_s23, 0  ;;  %s1761_s10 = scalar_lea.hbm %s2517_s0, 256 }
  0x9d   : > { %s2534_s2 = scalar_select %p55_p13, %s2155_s25, %s3112_s15  }
  0x9e   : > { %s2539_s17 = scalar_select %p255_p1, %s2131_s19, %s3113_s9  }
  0x9f   : > { %p1762_p9 = scmp.ne.s32.totalorder %s2517_s0, %s1761_s10  ;;  %p3114_p0 = scmp.ne.s32.totalorder %s3103_s16, 0 }
  0xa0   : > { %s1766_s26 = scalar_lea.hbm %s3109_s4, 1024  ;;  %p1767_p8 = scmp.lt.u32.totalorder %s2517_s0, %s3109_s4 }
  0xa1   : > { %p2545_p3 = pneg %p3114_p0  ;;  %p1768_p11 = scmp.lt.u32.totalorder %s1766_s26, %s1761_s10 }
  0xa2   : > { %p1770_p7 = scmp.lt.u32.totalorder %s1761_s10, %s2517_s0 }
  0xa3   : > { %s3115_s1 = scalar_select %p2545_p3, 1, 0 }
  0xa4   : > { %p1764_p2 = pnand %p2545_p3, %p1762_p9  ;;  %p1769_p6 = por %p1768_p11, %p1767_p8 }
  0xa6   : > { %p1765_p5 = pneg %p1764_p2  ;;  %p1771_p4 = por %p1770_p7, %p1769_p6 }
  0xa8   : > { %p1772_p12 = pnand %p1771_p4, %p1765_p5 }
  0xaa   : > { %1775 = shalt.err (!%p1772_p12)
}
  0xab   : > { %s1776_s9 = scalar_lea.vmem %s2529_s11, 256  ;;  %s2182_s21 = smov [#allocation11]  }
  0xac   : > { %p1777_p10 = scmp.ne.s32.totalorder %s2529_s11, %s1776_s9  ;;  %s1781_s8 = sshll.u32 %s2182_s21, 4  ;;  %s1782_s8 = int_to_ptr.vmem [resolvable:$false] %s1781_s8 }
  0xad   : > { %s1783_s23 = scalar_lea.vmem %s1782_s8, 512  ;;  %p1784_p9 = scmp.lt.s32.totalorder %s2529_s11, %s1782_s8 }
  0xae   : > { %p1779_p13 = pnand %p1777_p10, %p2545_p3  ;;  %p1785_p2 = scmp.lt.s32.totalorder %s1783_s23, %s1776_s9 }
  0xb0   : > { %p1780_p1 = pneg %p1779_p13  ;;  %p1786_p8 = por %p1785_p2, %p1784_p9 }
  0xb2   : > { %p1787_p11 = pnand %p1786_p8, %p1780_p1 }
  0xb4   : > { %1790 = shalt.err (!%p1787_p11)
}
  0xb5   : > { %s2183_s10 = smov 64   ;;  %s2184_s26 = smov 4  }
  0xb6   : > { %1512 = dma.hbm_to_vmem [thread:$0]  (!%p3114_p0), %s2517_s0, 256, %s2529_s11, %s2438_s20, %s2183_s10, %s2183_s10, %s2184_s26  }
  0xb7   : > { %s3116_s15 = sshll.u32 %s2167_s28, 8  ;;  %s3117_s5 = sld [smem:[#allocation52_spill]] }
  0xb8   : > { %s464_s23 = scalar_lea.vmem [#allocation12], %s2502_s27  ;;  %s2185_s18 = smov [#allocation9]  }
  0xb9   : > { %s471_s4 = sshll.u32 %s464_s23, 4  ;;  %s2582_s14 = sshll.u32 %s2185_s18, 4  ;;  %s2580_s4 = int_to_ptr.vmem [resolvable:$true] %s471_s4  ;;  %s390_s14 = int_to_ptr.vmem [resolvable:$true] %s2582_s14 }
  0xbd   : > { %s2577_s8 = scalar_lea.hbm %s3117_s5, %s3116_s15  ;;  %s1796_s15 = scalar_lea.hbm %s3117_s5, 1024 }
  0xbe   : > { %s1791_s29 = scalar_lea.hbm %s2577_s8, 256  ;;  %p1797_p4 = scmp.lt.u32.totalorder %s2577_s8, %s3117_s5 }
  0xbf   : > { %p1792_p5 = scmp.ne.s32.totalorder %s2577_s8, %s1791_s29  ;;  %p1798_p12 = scmp.lt.u32.totalorder %s1796_s15, %s1791_s29 }
  0xc0   : > { %p1800_p13 = scmp.lt.u32.totalorder %s1791_s29, %s2577_s8 }
  0xc1   : > { %p1794_p6 = pnand %p1792_p5, %p2545_p3  ;;  %p1799_p10 = por %p1798_p12, %p1797_p4 }
  0xc3   : > { %p1795_p7 = pneg %p1794_p6  ;;  %p1801_p1 = por %p1800_p13, %p1799_p10 }
  0xc5   : > { %p1802_p9 = pnand %p1801_p1, %p1795_p7 }
  0xc7   : > { %1805 = shalt.err (!%p1802_p9)
}
  0xc8   : > { %s1806_s27 = scalar_lea.vmem %s2580_s4, 256  ;;  %s2186_s18 = smov [#allocation12]  }
  0xc9   : > { %p1807_p2 = scmp.ne.s32.totalorder %s2580_s4, %s1806_s27  ;;  %s1811_s23 = sshll.u32 %s2186_s18, 4  ;;  %s1812_s23 = int_to_ptr.vmem [resolvable:$false] %s1811_s23 }
  0xca   : > { %s1813_s0 = scalar_lea.vmem %s1812_s23, 512  ;;  %p1814_p5 = scmp.lt.s32.totalorder %s2580_s4, %s1812_s23 }
  0xcb   : > { %p1809_p8 = pnand %p1807_p2, %p2545_p3  ;;  %p1815_p6 = scmp.lt.s32.totalorder %s1813_s0, %s1806_s27 }
  0xcd   : > { %p1810_p11 = pneg %p1809_p8  ;;  %p1816_p4 = por %p1815_p6, %p1814_p5 }
  0xcf   : > { %p1817_p12 = pnand %p1816_p4, %p1810_p11 }
  0xd1   : > { %1820 = shalt.err (!%p1817_p12)
}
  0xd2   : > { %1515 = dma.hbm_to_vmem [thread:$0]  (!%p3114_p0), %s2577_s8, 256, %s2580_s4, %s2476_s12, %s2183_s10, %s2183_s10, %s2184_s26  }
  0xd3   : > { %s3118_s29 = sand.u32 1, %s2143_s22   ;;  %s3119_s3 = sld [smem:[#allocation50_spill]] }
  0xd4   : > { %s2612_s11 = sshll.u32 %s3118_s29, 3  ;;  %p3120_p10 = scmp.ne.s32.totalorder %s3096_s13, 0 }
  0xd6   : > { %p3121_p13 = pneg %p3120_p10 }
  0xd9   : > { %s1821_s9 = scalar_lea.hbm %s3119_s3, 16 }
  0xda   : > { %p1822_p7 = scmp.ne.s32.totalorder %s3119_s3, %s1821_s9  ;;  %p1828_p2 = scmp.lt.u32.totalorder %s1821_s9, %s3119_s3 }
  0xdc   : > { %p1824_p1 = pnand %p1822_p7, %p3121_p13 }
  0xde   : > { %p1825_p9 = pneg %p1824_p1 }
  0xe0   : > { %p1830_p8 = pnand %p1828_p2, %p1825_p9 }
  0xe2   : > { %1833 = shalt.err (!%p1830_p8)
}
  0xe3   : > { %s1834_s4 = scalar_lea.vmem %s390_s14, 16  ;;  %p3122_p5 = pmov %p3121_p13 }
  0xe4   : > { %p1835_p11 = scmp.ne.s32.totalorder %s390_s14, %s1834_s4  ;;  %s1841_s8 = scalar_lea.vmem %s390_s14, 32 }
  0xe5   : > { %p1842_p12 = scmp.lt.s32.totalorder %s390_s14, %s390_s14  ;;  %p1843_p0 = scmp.lt.s32.totalorder %s1841_s8, %s1834_s4 }
  0xe6   : > { %p1837_p6 = pnand %p1835_p11, %p3122_p5 }
  0xe7   : > { %p1844_p3 = por %p1843_p0, %p1842_p12 }
  0xe8   : > { %p1838_p4 = pneg %p1837_p6 }
  0xea   : > { %p1845_p7 = pnand %p1844_p3, %p1838_p4 }
  0xec   : > { %1848 = shalt.err (!%p1845_p7)
}
  0xed   : > { %1502 = dma.hbm_to_vmem [thread:$0]  (!%p3120_p10), %s3119_s3, 16, %s390_s14, [#allocation10]  }
  0xee   : > { %s1424_s21 = sshll.u32 %s2167_s28, 7  ;;  %s3123_s6 = sld [smem:[#allocation53_spill]] }
  0xef   : > { %s485_s13 = scalar_lea.vmem [#allocation13], %s2612_s11  ;;  %p3124_p3 = scmp.ne.s32.totalorder %s3115_s1, 0 }
  0xf0   : > { %s492_s23 = sshll.u32 %s485_s13, 4  ;;  %s2643_s23 = int_to_ptr.vmem [resolvable:$true] %s492_s23 }
  0xf4   : > { %s2640_s18 = scalar_lea.hbm %s3123_s6, %s1424_s21  ;;  %s1854_s8 = scalar_lea.hbm %s3123_s6, 512 }
  0xf5   : > { %s1849_s0 = scalar_lea.hbm %s2640_s18, 128  ;;  %p1855_p1 = scmp.lt.u32.totalorder %s2640_s18, %s3123_s6 }
  0xf6   : > { %p1850_p0 = scmp.ne.s32.totalorder %s2640_s18, %s1849_s0  ;;  %p1856_p9 = scmp.lt.u32.totalorder %s1854_s8, %s1849_s0 }
  0xf7   : > { %p1858_p8 = scmp.lt.u32.totalorder %s1849_s0, %s2640_s18 }
  0xf8   : > { %p1852_p13 = pnand %p1850_p0, %p3124_p3  ;;  %p1857_p2 = por %p1856_p9, %p1855_p1 }
  0xfa   : > { %p1853_p10 = pneg %p1852_p13  ;;  %p1859_p11 = por %p1858_p8, %p1857_p2 }
  0xfc   : > { %p1860_p5 = pnand %p1859_p11, %p1853_p10 }
  0xfe   : > { %1863 = shalt.err (!%p1860_p5)
}
  0xff   : > { %s1864_s9 = scalar_lea.vmem %s2643_s23, 128  ;;  %s2187_s27 = smov [#allocation13]  }
 0x100   : > { %p1865_p6 = scmp.ne.s32.totalorder %s2643_s23, %s1864_s9  ;;  %s1869_s13 = sshll.u32 %s2187_s27, 4  ;;  %s1870_s13 = int_to_ptr.vmem [resolvable:$false] %s1869_s13 }
 0x101   : > { %s1871_s14 = scalar_lea.vmem %s1870_s13, 256  ;;  %p1872_p7 = scmp.lt.s32.totalorder %s2643_s23, %s1870_s13 }
 0x102   : > { %p1867_p4 = pnand %p1865_p6, %p3124_p3  ;;  %p1873_p0 = scmp.lt.s32.totalorder %s1871_s14, %s1864_s9 }
 0x104   : > { %p1868_p12 = pneg %p1867_p4  ;;  %p1874_p13 = por %p1873_p0, %p1872_p7 }
 0x106   : > { %p1875_p1 = pnand %p1874_p13, %p1868_p12 }
 0x108   : > { %1878 = shalt.err (!%p1875_p1)
}
 0x109   : > { %p3125_p10 = scmp.ne.s32.totalorder %s3103_s16, 0  ;;  %s2675_s8 = scalar_lea.hbm %s3020_s7, %s1424_s21 }
 0x10a   : > { %s506_s29 = scalar_lea.vmem [#allocation14], %s2612_s11  ;;  %s1879_s9 = scalar_lea.hbm %s2675_s8, 128 }
 0x10b   : > { %1518 = dma.hbm_to_vmem [thread:$0]  (!%p3125_p10), %s2640_s18, 128, %s2643_s23, %s2438_s20, %s2183_s10, %s2183_s10, %s2184_s26  }
 0x10c   : > { %s513_s15 = sshll.u32 %s506_s29, 4  ;;  %p1880_p9 = scmp.ne.s32.totalorder %s2675_s8, %s1879_s9  ;;  %s2678_s15 = int_to_ptr.vmem [resolvable:$true] %s513_s15 }
 0x10d   : > { %s1884_s23 = scalar_lea.hbm %s3020_s7, 512  ;;  %p1885_p11 = scmp.lt.u32.totalorder %s2675_s8, %s3020_s7 }
 0x10e   : > { %p1882_p2 = pnand %p1880_p9, %p3124_p3  ;;  %p1886_p5 = scmp.lt.u32.totalorder %s1884_s23, %s1879_s9 }
 0x10f   : > { %p1888_p4 = scmp.lt.u32.totalorder %s1879_s9, %s2675_s8 }
 0x110   : > { %p1883_p8 = pneg %p1882_p2  ;;  %p1887_p6 = por %p1886_p5, %p1885_p11 }
 0x112   : > { %p1889_p12 = por %p1888_p4, %p1887_p6 }
 0x114   : > { %p1890_p7 = pnand %p1889_p12, %p1883_p8 }
 0x116   : > { %1893 = shalt.err (!%p1890_p7)
}
 0x117   : > { %s1894_s11 = scalar_lea.vmem %s2678_s15, 128  ;;  %s2188_s13 = smov [#allocation14]  }
 0x118   : > { %p1895_p0 = scmp.ne.s32.totalorder %s2678_s15, %s1894_s11  ;;  %s1899_s14 = sshll.u32 %s2188_s13, 4  ;;  %s1900_s14 = int_to_ptr.vmem [resolvable:$false] %s1899_s14 }
 0x119   : > { %s1901_s0 = scalar_lea.vmem %s1900_s14, 256  ;;  %p1902_p9 = scmp.lt.s32.totalorder %s2678_s15, %s1900_s14 }
 0x11a   : > { %p1897_p13 = pnand %p1895_p0, %p3124_p3  ;;  %p1903_p2 = scmp.lt.s32.totalorder %s1901_s0, %s1894_s11 }
 0x11c   : > { %p1898_p1 = pneg %p1897_p13  ;;  %p1904_p11 = por %p1903_p2, %p1902_p9 }
 0x11e   : > { %p1905_p5 = pnand %p1904_p11, %p1898_p1 }
 0x120   : > { %1908 = shalt.err (!%p1905_p5)
}
 0x121   : > { %1521 = dma.hbm_to_vmem [thread:$0]  (!%p3125_p10), %s2675_s8, 128, %s2678_s15, %s2476_s12, %s2183_s10, %s2183_s10, %s2184_s26  }
 0x122   : > { %s3126_s1 = sld [smem:[#allocation44_spill]] }
 0x128   : > { %p3127_p3 = scmp.ne.s32.totalorder %s3126_s1, 0 }
 0x129   : > { %s3128_s4 = sld [smem:[#allocation39_spill]] (!%p3127_p3)  ;;  %s3129_s29 = sld [smem:[#allocation35_spill]] (!%p3127_p3) }
 0x12a   : > { %525 = sbr.rel (%p3127_p3) target bundleno = 975 (0x3cf), region = 52  ;;  %s3130_s9 = sld [smem:[#allocation40_spill]] (!%p3127_p3) }
 0x12f   : > { %s2708_s20 = sand.u32 (!%p3127_p3), 1, %s3128_s4   ;;  %s529_s18 = sand.u32 (!%p3127_p3), 1, %s3129_s29  }
 0x130   : > { %s2711_s23 = sshll.u32 (!%p3127_p3), %s529_s18, 4  ;;  %s528_s16 = scalar_lea.sflag (!%p3127_p3), [#allocation4], %s2708_s20 }
 0x131   : > { %s531_s27 = scalar_lea.vmem [#allocation3], %s2711_s23  ;;  %p3131_p8 = scmp.ne.s32.totalorder %s3130_s9, 0 }
 0x133   : > { %2078 = dma.done.wait (%p3131_p8), %s528_s16, 256  }
 0x134   : > { %2080 = vsyncadd (%p3131_p8), %s528_s16, 4294967040  ;;  %s2719_s12 = sshll.u32 %s529_s18, 3  ;;  %s537_s10 = scalar_lea.sflag [#allocation7], %s2708_s20 }
 0x135   : > { %2082 = dma.done.wait (%p3131_p8), %s537_s10, 128  }
 0x136   : > { %2084 = vsyncadd (%p3131_p8), %s537_s10, 4294967168  ;;  %p3132_p10 = scmp.eq.s32.totalorder %s3128_s4, 0 }
 0x138   : > { %2086 = dma.done.wait (%p3132_p10), [#allocation7], 16   ;;  %p3133_p6 = pmov %p3132_p10 }
 0x13a   : > { %2088 = vsyncadd (%p3133_p6), [#allocation7], 4294967280  ;;  %p3134_p4 = pmov %p3133_p6 }
 0x13c   : > { %2090 = dma.done.wait (%p3134_p4), [#allocation10], 16   ;;  %p3135_p12 = pmov %p3134_p4 }
 0x13d   : > { %s3136_s8 = sld [smem:[#allocation34_spill]]  ;;  %s3137_s15 = sld [smem:[#allocation41_spill]] }
 0x13e   : > { %2092 = vsyncadd (%p3135_p12), [#allocation10], 4294967280 }
 0x143   : > { %s555_s21 = sand.u32 1, %s3136_s8   ;;  %p3138_p7 = scmp.ne.s32.totalorder %s3137_s15, 0 }
 0x144   : > { %s2736_s11 = sshll.u32 %s555_s21, 4 }
 0x145   : > { %s557_s13 = scalar_lea.vmem [#allocation11], %s2736_s11 }
 0x146   : > { %2094 = dma.done.wait (%p3138_p7), %s528_s16, 256  }
 0x147   : > { %2096 = vsyncadd (%p3138_p7), %s528_s16, 4294967040  ;;  %s566_s14 = scalar_lea.vmem [#allocation12], %s2736_s11 }
 0x148   : > { %2098 = dma.done.wait (%p3138_p7), %s537_s10, 256  }
 0x149   : > { %2100 = vsyncadd (%p3138_p7), %s537_s10, 4294967040  ;;  %s2748_s0 = sshll.u32 %s555_s21, 3 }
 0x14a   : > { %2102 = dma.done.wait (%p3138_p7), %s528_s16, 128  }
 0x14b   : > { %2104 = vsyncadd (%p3138_p7), %s528_s16, 4294967168 }
 0x14c   : > { %2106 = dma.done.wait (%p3138_p7), %s537_s10, 128  }
 0x14d   : > { %2108 = vsyncadd (%p3138_p7), %s537_s10, 4294967168  ;;  %s3139_s29 = sld [smem:[#allocation33_spill]]  ;;  %s3140_s4 = sld [smem:[#allocation36_spill]] }
 0x153   : > { %s2761_s9 = sand.u32 1, %s3139_s29   ;;  %p1388_p0 = scmp.ne.s32.totalorder %s3140_s4, 0 }
 0x154   : > { %s1384_s18 = sshll.u32 %s2761_s9, 3  ;;  %s1386_s8 = sshll.u32 %s2761_s9, 2  ;;  %v668_v0 = vld [vmem:[%s531_s27] sm:$0xff] (!%p1388_p0)  ;;  %vm672_vm0 = vcmask (!%p1388_p0), 261120   ;;  %v669_v1 = vld [vmem:[%s531_s27 + $0x8] sm:$0xff] (!%p1388_p0) }
 0x155   : > { %s2765_s21 = scalar_lea.vmem [#allocation15], %s1384_s18  ;;  %s2767_s26 = scalar_lea.vmem [#allocation16], %s1384_s18  ;;  %v673_v2 = vsel (!%p1388_p0), %vm672_vm0, %v668_v0, 0.0  ;;  %v676_v3 = vsel (!%p1388_p0), %vm672_vm0, %v669_v1, 0.0  ;;  %v1389_v22 = vld [vmem:[#allocation8] ss:$0 sm:$0xff] (!%p1388_p0) }
 0x156   : > { %s2769_s16 = scalar_lea.vmem [#allocation18], %s1386_s8  ;;  %s2771_s1 = scalar_lea.vmem [#allocation19], %s1386_s8  ;;  %674 = vadd.xlane.f32.xlu0 (!%p1388_p0), %v673_v2  ;;  %v1390_v26 = vld [vmem:[#allocation9] ss:$0 sm:$0xff] (!%p1388_p0) }
 0x157   : > { %667 = sbr.rel (%p1388_p0) target bundleno = 661 (0x295), region = 88 }
 0x15a   : > { %677 = vadd.xlane.f32.xlu0 (!%p1388_p0), %v676_v3 }
 0x1e3   : > { %v675_v4 = vpop.xlane.xlu0 %674 }
 0x1e4   : > { %v680_v5 = vmul.f32 0.03125, %v675_v4 }
 0x1e6   : > { %v682_v6 = vsub.f32 %v668_v0, %v680_v5 }
 0x1e7   : > { %v678_v7 = vpop.xlane.xlu0 %677 }
 0x1e8   : > { %v681_v8 = vmul.f32 0.03125, %v678_v7  ;;  %v684_v9 = vmul.f32 %v682_v6, %v682_v6 }
 0x1ea   : > { %v683_v10 = vsub.f32 %v669_v1, %v681_v8  ;;  %v686_v11 = vsel %vm672_vm0, %v684_v9, 0.0 }
 0x1eb   : > { %687 = vadd.xlane.f32.xlu1 %v686_v11 }
 0x1ec   : > { %v685_v12 = vmul.f32 %v683_v10, %v683_v10 }
 0x1ee   : > { %v689_v13 = vsel %vm672_vm0, %v685_v12, 0.0 }
 0x1ef   : > { %690 = vadd.xlane.f32.xlu1 %v689_v13 }
 0x278   : > { %v688_v14 = vpop.xlane.xlu1 %687 }
 0x279   : > { %v692_v15 = vmul.f32 0.03125, %v688_v14 }
 0x27b   : > { %v694_v16 = vadd.f32 1e-05, %v692_v15 }
 0x27c   : > { %v691_v17 = vpop.xlane.xlu1 %690 }
 0x27d   : > { %1663 = vrsqrt.f32 %v694_v16  ;;  %v693_v18 = vmul.f32 0.03125, %v691_v17 }
 0x27f   : > { %v695_v19 = vadd.f32 1e-05, %v693_v18 }
 0x281   : > { %1665 = vrsqrt.f32 %v695_v19 }
 0x287   : > { %v1664_v20 = vpop.eup %1663 }
 0x288   : > { %v698_v21 = vmul.f32 %v1664_v20, %v682_v6 }
 0x28a   : > { %v706_v24 = vmul.f32 %v1389_v22, %v698_v21 }
 0x28b   : > { %v1666_v23 = vpop.eup %1665 }
 0x28c   : > { %v699_v25 = vmul.f32 %v1666_v23, %v683_v10  ;;  %v714_v28 = vadd.f32 %v1390_v26, %v706_v24 }
 0x28e   : > { %v707_v27 = vmul.f32 %v1389_v22, %v699_v25 }
 0x290   : > { %v715_v29 = vadd.f32 %v1390_v26, %v707_v27 }
 0x292   : > { %v716_v30 = vpack.c.bf16 %v715_v29, %v714_v28 }
 0x294   : > { %717 = vst.msk [vmem:[#allocation2] sm:$0xff] %vm672_vm0, %v716_v30 }
 0x295 PF: > { %v1667_v31 = vld [vmem:[%s557_s13] sm:$0xff]   ;;  %v2189_v32 = vmov 0.0   ;;  %v1669_v34 = vld [vmem:[%s557_s13 + $0x8] sm:$0xff]   ;;  %vm2190_vm1 = vmmov 0   ;;  %vm737_vm2 = vcmask 261120   ;;  %s3141_s23 = scalar_lea.vmem [#allocation13], %s2748_s0 }
 0x296   : > { %1440 = vmatprep.subr.bf16.mxu0 %v2189_v32  ;;  %1448 = vmatprep.subr.bf16.mxu1 %v2189_v32  ;;  %v1668_v33 = vld [vmem:[%s566_s14] sm:$0xff]   ;;  %v1670_v35 = vld [vmem:[%s566_s14 + $0x8] sm:$0xff]   ;;  %s3142_s27 = sld [smem:[#allocation36_spill]]  ;;  %s3143_s10 = sld [smem:[#allocation37_spill]]  ;;  %vm868_vm3 = vcmask 130048   ;;  %vm790_vm4 = vcmask 60416  }
 0x297   : > { %1441 = vmatpush3.bf16.msra.mxu0 %v1667_v31  ;;  %1444 = vmatprep.mubr.msk.bf16.mxu0 %vm2190_vm1, %v2189_v32  ;;  %v1671_v37 = vld [vmem:[%s3141_s23] sm:$0xff]   ;;  %s3144_s15 = scalar_lea.vmem [#allocation14], %s2748_s0  ;;  %s3145_s11 = scalar_lea.vmem [#allocation6], %s2719_s12 }
 0x298   : > { %1449 = vmatpush3.bf16.msra.mxu1 %v1668_v33  ;;  %1442 = vmatprep.subr.bf16.mxu0 %v2189_v32  ;;  %v1672_v38 = vld [vmem:[%s3144_s15] sm:$0xff]   ;;  %s1013_s18 = sshll.u32 %s2767_s26, 4  ;;  %s995_s12 = sshll.u32 %s2765_s21, 4  ;;  %s2821_s12 = int_to_ptr.vmem [resolvable:$true] %s995_s12  ;;  %s2825_s18 = int_to_ptr.vmem [resolvable:$true] %s1013_s18 }
 0x299   : > { %1450 = vmatprep.subr.bf16.mxu1 %v2189_v32  ;;  %1452 = vmatprep.mubr.msk.bf16.mxu1 %vm2190_vm1, %v2189_v32  ;;  %v719_v39 = vld [vmem:[%s3145_s11] sm:$0xff] }
 0x29a   : > { %v720_v40 = vpack.c.bf16 %v719_v39, %v719_v39 }
 0x29b   : > { %1443 = vmatpush3.bf16.msra.mxu0 %v1669_v34  ;;  %v718_v36 = vld [vmem:[#allocation2] sm:$0xff] }
 0x29c   : > { %1451 = vmatpush3.bf16.msra.mxu1 %v1670_v35  ;;  %1456 = vmatprep.subr.bf16.mxu0 %v2189_v32  ;;  %s1409_s13 = sshll.u32 %s3142_s27, 1  ;;  %s1410_s14 = sshll.u32 %s3143_s10, 3 }
 0x29d   : > { %1462 = vmatprep.subr.bf16.mxu1 %v2189_v32  ;;  %s992_s0 = sadd.s32 %s1410_s14, %s1409_s13  ;;  %s1415_s29 = sshll.u32 %s3143_s10, 2 }
 0x29e   : > { %1445 = vmatmul.mubr.msk.bf16.vlgmr.msra.gmra.mrb[0].mxu0 %vm737_vm2, %v718_v36  ;;  %s1411_s4 = sshll.u32 %s992_s0, 6  ;;  %s2807_s8 = sadd.s32 %s3142_s27, %s1415_s29 }
 0x29f   : > { %1453 = vmatmul.mubr.msk.bf16.vlgmr.msra.gmra.mrb[0].mxu1 %vm737_vm2, %v718_v36  ;;  %1457 = vmatpush3.bf16.msra.mxu0 %v1671_v37  ;;  %s3146_s10 = sld [smem:[#allocation55_spill]]  ;;  %s3147_s27 = sld [smem:[#allocation42_spill]] }
 0x2a0   : > { %1463 = vmatpush3.bf16.msra.mxu1 %v1672_v38  ;;  %1458 = vmatprep.mubr.msk.bf16.mxu0 %vm2190_vm1, %v2189_v32  ;;  %s3148_s0 = sld [smem:[#allocation54_spill]]  ;;  %s1416_s23 = sshll.u32 %s2807_s8, 6 }
 0x2a1   : > { %1464 = vmatprep.mubr.msk.bf16.mxu1 %vm2190_vm1, %v2189_v32  ;;  %s1909_s13 = scalar_lea.vmem %s2821_s12, 128  ;;  %s2191_s14 = smov [#allocation15]  }
 0x2a2   : > { %p1910_p13 = scmp.ne.s32.totalorder %s2821_s12, %s1909_s13  ;;  %s1913_s5 = sshll.u32 %s2191_s14, 4  ;;  %s1914_s5 = int_to_ptr.vmem [resolvable:$false] %s1913_s5 }
 0x2a3   : > { %s1915_s6 = scalar_lea.vmem %s1914_s5, 256  ;;  %p1916_p11 = scmp.lt.s32.totalorder %s2821_s12, %s1914_s5 }
 0x2a4   : > { %p1917_p5 = scmp.lt.s32.totalorder %s1915_s6, %s1909_s13 }
 0x2a5   : > { %s2812_s11 = scalar_lea.hbm %s3146_s10, %s1411_s4  ;;  %p3149_p1 = scmp.ne.s32.totalorder %s3147_s27, 0 }
 0x2a6   : > { %1459 = vmatmul.mubr.msk.bf16.vlgmr.msra.gmra.mrb[4].mxu0 %vm868_vm3, %v720_v40  ;;  %s2819_s29 = scalar_lea.hbm %s3148_s0, %s1411_s4  ;;  %s965_s4 = scalar_lea.sflag [#allocation5], %s2761_s9 }
 0x2a7   : > { %1465 = vmatmul.mubr.msk.bf16.vlgmr.msra.gmra.mrb[4].mxu1 %vm868_vm3, %v720_v40  ;;  %p1911_p9 = pnand %p1910_p13, %p3149_p1  ;;  %p1918_p3 = por %p1917_p5, %p1916_p11 }
 0x2a9   : > { %p1912_p2 = pneg %p1911_p9 }
 0x2ab   : > { %p1919_p8 = pnand %p1918_p3, %p1912_p2 }
 0x371   : > { %v775_v41 = vpop.f32.mrb[0].mxu0 }
 0x372   : > { %v1426_v42 = vpack.c.bf16 %v775_v41, %v775_v41  ;;  %v843_v43 = vpop.f32.mrb[0].mxu1  ;;  %v1446_v44 = vpop.f32.mrb[1].mxu0 }
 0x373   : > { %v1428_v45 = vpack.c.bf16 %v843_v43, %v843_v43  ;;  %v1454_v46 = vpop.f32.mrb[1].mxu1  ;;  %v778_v47 = vpop.f32.mrb[2].mxu0 }
 0x374   : > { %791 = vst.msk [vmem:[%s2765_s21] sm:$0xf] %vm790_vm4, %v1426_v42  ;;  %v1427_v48 = vpack.c.bf16 %v778_v47, %v778_v47  ;;  %v846_v49 = vpop.f32.mrb[2].mxu1  ;;  %v1447_v50 = vpop.f32.mrb[3].mxu0 }
 0x375   : > { %858 = vst.msk [vmem:[%s2767_s26] sm:$0xf] %vm790_vm4, %v1428_v45  ;;  %v1429_v51 = vpack.c.bf16 %v846_v49, %v846_v49  ;;  %v1455_v52 = vpop.f32.mrb[3].mxu1 }
 0x376   : > { %792 = vst.msk [vmem:[%s2765_s21 + $0x4] sm:$0xf] %vm790_vm4, %v1427_v48 }
 0x377   : > { %859 = vst.msk [vmem:[%s2767_s26 + $0x4] sm:$0xf] %vm790_vm4, %v1429_v51 }
 0x378   : > { %1922 = shalt.err (!%p1919_p8)
}
 0x379   : > { %s1923_s26 = scalar_lea.hbm %s2819_s29, 128  ;;  %s1927_s14 = scalar_lea.hbm %s3148_s0, 1024 }
 0x37a   : > { %p1924_p10 = scmp.ne.s32.totalorder %s2819_s29, %s1923_s26  ;;  %p1928_p12 = scmp.lt.u32.totalorder %s2819_s29, %s3148_s0 }
 0x37b   : > { %p1929_p7 = scmp.lt.u32.totalorder %s1927_s14, %s1923_s26  ;;  %p1931_p13 = scmp.lt.u32.totalorder %s1923_s26, %s2819_s29 }
 0x37c   : > { %p1925_p6 = pnand %p1924_p10, %p3149_p1 }
 0x37d   : > { %p1930_p0 = por %p1929_p7, %p1928_p12 }
 0x37e   : > { %p1926_p4 = pneg %p1925_p6 }
 0x37f   : > { %p1932_p9 = por %p1931_p13, %p1930_p0 }
 0x381   : > { %p1933_p2 = pnand %p1932_p9, %p1926_p4 }
 0x383   : > { %1936 = shalt.err (!%p1933_p2)
}
 0x384   : > { %s2192_s6 = smov 64   ;;  %s2193_s3 = smov 4  }
 0x385   : > { %1488 = dma.vmem_to_hbm [thread:$0]  (%p3149_p1), %s2821_s12, 128, %s2819_s29, %s965_s4, %s2192_s6, %s2192_s6, %s2193_s3  }
 0x386   : > { %s970_s15 = scalar_lea.sflag [#allocation17], %s2708_s20  ;;  %s1937_s13 = scalar_lea.vmem %s2825_s18, 128 }
 0x387   : > { %p1938_p11 = scmp.ne.s32.totalorder %s2825_s18, %s1937_s13  ;;  %s2194_s26 = smov [#allocation16]  }
 0x388   : > { %s1941_s21 = sshll.u32 %s2194_s26, 4  ;;  %s1942_s21 = int_to_ptr.vmem [resolvable:$false] %s1941_s21 }
 0x389   : > { %p1939_p5 = pnand %p1938_p11, %p3149_p1  ;;  %s1943_s14 = scalar_lea.vmem %s1942_s21, 256 }
 0x38a   : > { %p1944_p8 = scmp.lt.s32.totalorder %s2825_s18, %s1942_s21  ;;  %p1945_p10 = scmp.lt.s32.totalorder %s1943_s14, %s1937_s13 }
 0x38b   : > { %p1940_p3 = pneg %p1939_p5 }
 0x38c   : > { %p1946_p6 = por %p1945_p10, %p1944_p8 }
 0x38e   : > { %p1947_p4 = pnand %p1946_p6, %p1940_p3 }
 0x390   : > { %1950 = shalt.err (!%p1947_p4)
}
 0x391   : > { %s1951_s12 = scalar_lea.hbm %s2812_s11, 128  ;;  %s1955_s5 = scalar_lea.hbm %s3146_s10, 1024 }
 0x392   : > { %p1952_p12 = scmp.ne.s32.totalorder %s2812_s11, %s1951_s12  ;;  %p1956_p13 = scmp.lt.u32.totalorder %s2812_s11, %s3146_s10 }
 0x393   : > { %p1957_p9 = scmp.lt.u32.totalorder %s1955_s5, %s1951_s12  ;;  %p1959_p11 = scmp.lt.u32.totalorder %s1951_s12, %s2812_s11 }
 0x394   : > { %p1953_p7 = pnand %p1952_p12, %p3149_p1 }
 0x395   : > { %p1958_p2 = por %p1957_p9, %p1956_p13 }
 0x396   : > { %p1954_p0 = pneg %p1953_p7 }
 0x397   : > { %p1960_p5 = por %p1959_p11, %p1958_p2 }
 0x399   : > { %p1961_p3 = pnand %p1960_p5, %p1954_p0 }
 0x39b   : > { %1964 = shalt.err (!%p1961_p3)
}
 0x39c   : > { %1489 = dma.vmem_to_hbm [thread:$0]  (%p3149_p1), %s2825_s18, 128, %s2812_s11, %s970_s15, %s2192_s6, %s2192_s6, %s2193_s3   ;;  %v906_v53 = vpop.f32.mrb[4].mxu0  ;;  %v956_v55 = vpop.f32.mrb[4].mxu1 }
 0x39d   : > { %s3150_s12 = sld [smem:[#allocation56_spill]]  ;;  %v912_v54 = vpack.c.bf16 %v906_v53, %v906_v53  ;;  %v1460_v56 = vpop.f32.mrb[5].mxu0  ;;  %s3151_s4 = sshll.u32 %s2769_s16, 4  ;;  %v962_v57 = vpack.c.bf16 %v956_v55, %v956_v55  ;;  %v1466_v58 = vpop.f32.mrb[5].mxu1  ;;  %s2897_s4 = int_to_ptr.vmem [resolvable:$true] %s3151_s4 }
 0x39e   : > { %v909_v59 = vpop.f32.mrb[6].mxu0  ;;  %s3152_s6 = sld [smem:[#allocation57_spill]]  ;;  %s3153_s5 = sshll.u32 %s2771_s1, 4  ;;  %v959_v60 = vpop.f32.mrb[6].mxu1  ;;  %s2908_s5 = int_to_ptr.vmem [resolvable:$true] %s3153_s5 }
 0x39f   : > { %913 = vst.msk [vmem:[%s2769_s16] sm:$0xf] %vm790_vm4, %v912_v54  ;;  %v1461_v61 = vpop.f32.mrb[7].mxu0  ;;  %963 = vst.msk [vmem:[%s2771_s1] sm:$0xf] %vm790_vm4, %v962_v57  ;;  %v1467_v62 = vpop.f32.mrb[7].mxu1 }
 0x3a0   : > { %s1965_s26 = scalar_lea.vmem %s2897_s4, 64  ;;  %s2195_s8 = smov [#allocation18]  }
 0x3a1   : > { %p1966_p8 = scmp.ne.s32.totalorder %s2897_s4, %s1965_s26  ;;  %s1969_s21 = sshll.u32 %s2195_s8, 4  ;;  %s1970_s21 = int_to_ptr.vmem [resolvable:$false] %s1969_s21 }
 0x3a2   : > { %p1972_p4 = scmp.lt.s32.totalorder %s2897_s4, %s1970_s21 }
 0x3a3   : > { %s2893_s29 = scalar_lea.hbm %s3150_s12, %s1416_s23  ;;  %p1967_p10 = pnand %p1966_p8, %p3149_p1 }
 0x3a4   : > { %s2904_s3 = scalar_lea.hbm %s3152_s6, %s1416_s23  ;;  %s1971_s23 = scalar_lea.vmem %s1970_s21, 128 }
 0x3a5   : > { %p1968_p6 = pneg %p1967_p10  ;;  %p1973_p12 = scmp.lt.s32.totalorder %s1971_s23, %s1965_s26 }
 0x3a7   : > { %p1974_p7 = por %p1973_p12, %p1972_p4 }
 0x3a9   : > { %p1975_p0 = pnand %p1974_p7, %p1968_p6 }
 0x3ab   : > { %1978 = shalt.err (!%p1975_p0)
}
 0x3ac   : > { %s1979_s1 = scalar_lea.hbm %s2893_s29, 64  ;;  %s1983_s14 = scalar_lea.hbm %s3150_s12, 512 }
 0x3ad   : > { %p1980_p13 = scmp.ne.s32.totalorder %s2893_s29, %s1979_s1  ;;  %p1984_p11 = scmp.lt.u32.totalorder %s2893_s29, %s3150_s12 }
 0x3ae   : > { %p1985_p5 = scmp.lt.u32.totalorder %s1983_s14, %s1979_s1  ;;  %p1987_p8 = scmp.lt.u32.totalorder %s1979_s1, %s2893_s29 }
 0x3af   : > { %p1981_p9 = pnand %p1980_p13, %p3149_p1 }
 0x3b0   : > { %p1986_p3 = por %p1985_p5, %p1984_p11 }
 0x3b1   : > { %p1982_p2 = pneg %p1981_p9 }
 0x3b2   : > { %p1988_p10 = por %p1987_p8, %p1986_p3 }
 0x3b4   : > { %p1989_p6 = pnand %p1988_p10, %p1982_p2 }
 0x3b6   : > { %1992 = shalt.err (!%p1989_p6)
}
 0x3b7   : > { %1490 = dma.vmem_to_hbm [thread:$0]  (%p3149_p1), %s2897_s4, 64, %s2893_s29, %s970_s15  }
 0x3b8   : > { %s980_s26 = scalar_lea.sflag [#allocation20], %s2761_s9  ;;  %s1993_s8 = scalar_lea.vmem %s2908_s5, 64 }
 0x3b9   : > { %p1994_p4 = scmp.ne.s32.totalorder %s2908_s5, %s1993_s8  ;;  %s2196_s21 = smov [#allocation19]  }
 0x3ba   : > { %s1997_s23 = sshll.u32 %s2196_s21, 4  ;;  %s1998_s23 = int_to_ptr.vmem [resolvable:$false] %s1997_s23 }
 0x3bb   : > { %p1995_p12 = pnand %p1994_p4, %p3149_p1  ;;  %s1999_s1 = scalar_lea.vmem %s1998_s23, 128 }
 0x3bc   : > { %p2000_p0 = scmp.lt.s32.totalorder %s2908_s5, %s1998_s23  ;;  %p2001_p13 = scmp.lt.s32.totalorder %s1999_s1, %s1993_s8 }
 0x3bd   : > { %p1996_p7 = pneg %p1995_p12 }
 0x3be   : > { %p2002_p9 = por %p2001_p13, %p2000_p0 }
 0x3c0   : > { %p2003_p2 = pnand %p2002_p9, %p1996_p7 }
 0x3c2   : > { %2006 = shalt.err (!%p2003_p2)
}
 0x3c3   : > { %s2007_s20 = scalar_lea.hbm %s2904_s3, 64  ;;  %s2011_s29 = scalar_lea.hbm %s3152_s6, 512 }
 0x3c4   : > { %p2008_p11 = scmp.ne.s32.totalorder %s2904_s3, %s2007_s20  ;;  %p2012_p8 = scmp.lt.u32.totalorder %s2904_s3, %s3152_s6 }
 0x3c5   : > { %p2013_p10 = scmp.lt.u32.totalorder %s2011_s29, %s2007_s20  ;;  %p2015_p4 = scmp.lt.u32.totalorder %s2007_s20, %s2904_s3 }
 0x3c6   : > { %p2009_p5 = pnand %p2008_p11, %p3149_p1 }
 0x3c7   : > { %p2014_p6 = por %p2013_p10, %p2012_p8 }
 0x3c8   : > { %p2010_p3 = pneg %p2009_p5 }
 0x3c9   : > { %p2016_p12 = por %p2015_p4, %p2014_p6 }
 0x3cb   : > { %p2017_p7 = pnand %p2016_p12, %p2010_p3 }
 0x3cd   : > { %2020 = shalt.err (!%p2017_p7)
}
 0x3ce   : > { %1491 = dma.vmem_to_hbm [thread:$0]  (%p3149_p1), %s2908_s5, 64, %s2904_s3, %s980_s26  }
 0x3cf PF: > { %s3154_s13 = sld [smem:[#allocation32_spill]]  ;;  %s3155_s14 = sld [smem:[#allocation43_spill]] }
 0x3d0   : > { %p1540_p0 = scmp.ge.s32.totalorder %s2175_s30, 2 }
 0x3d5   : > { %s1058_s18 = sand.u32 1, %s3154_s13   ;;  %p3156_p13 = scmp.ne.s32.totalorder %s3155_s14, 0 }
 0x3d6   : > { %s1059_s11 = scalar_lea.sflag [#allocation5], %s1058_s18 }
 0x3d7   : > { %p1523_p9 = pnand %p1540_p0, %p3156_p13 }
 0x3d9   : > { %2110 = dma.done.wait (!%p1523_p9), %s1059_s11, 128  }
 0x3da   : > { %2112 = vsyncadd (!%p1523_p9), %s1059_s11, 4294967168  ;;  %s3157_s8 = sadd.s32 4294967294, %s2175_s30  }
 0x3db   : > { %s1067_s21 = sand.u32 1, %s3157_s8  }
 0x3dc   : > { %s1068_s23 = scalar_lea.sflag [#allocation17], %s1067_s21 }
 0x3dd   : > { %2114 = dma.done.wait (!%p1523_p9), %s1068_s23, 192  }
 0x3de   : > { %2116 = vsyncadd (!%p1523_p9), %s1068_s23, 4294967104  ;;  %s1086_s27 = scalar_lea.sflag [#allocation20], %s1058_s18 }
 0x3df   : > { %2118 = dma.done.wait (!%p1523_p9), %s1086_s27, 64  }
 0x3e0   : > { %2120 = vsyncadd (!%p1523_p9), %s1086_s27, 4294967232  ;;  %s38_s30 = sadd.s32 1, %s2175_s30   ;;  %s3159_s5 = sld [smem:[#allocation33_spill]] }
 0x3e1   : > { %p2966_p1 = scmp.ge.s32.totalorder %s38_s30, 10   ;;  %s3160_s26 = smov %s2539_s17 }
 0x3e2   : > { %s3161_s20 = sld [smem:[#allocation34_spill]]  ;;  %s3162_s23 = sld [smem:[#allocation35_spill]] }
 0x3e3   : > { %s3163_s27 = sld [smem:[#allocation38_spill]]  ;;  %s3164_s1 = sld [smem:[#allocation45_spill]] }
 0x3e4   : > { %s3165_s29 = sld [smem:[#allocation46_spill]]  ;;  %s3167_s18 = smov %s2131_s19 }
 0x3e5   : > { %s3168_s19 = smov %s3160_s26  ;;  %s3169_s21 = smov %s2143_s22 }
 0x3e6   : > { %s3166_s17 = smov %s3159_s5  ;;  %s3170_s22 = smov %s2525_s24 }
 0x3e7   : > { %s3171_s24 = smov %s2155_s25  ;;  %s3172_s25 = smov %s2534_s2 }
 0x3e8   : > { %s3173_s26 = smov %s2167_s28  ;;  %37 = sbr.rel (!%p2966_p1) target bundleno = 29 (0x1d), region = 215 }
 0x3e9   : > { %s3174_s28 = smov %s3164_s1 }
 0x3ef   :  { %1091 = vsyncpa [#allocation4], 1 }
 0x3f0   :  { %1093 = vsyncpa [#allocation4 + $0x1], 1 }
 0x3f1   :  { %1094 = vsyncpa [#allocation7], 1 }
 0x3f2   :  { %1096 = vsyncpa [#allocation7 + $0x1], 1 }
 0x3f3   :  { %1097 = vsyncpa [#allocation10], 1 }
 0x3f4   :  { %1098 = vsyncpa [#allocation5], 1 }
 0x3f5   :  { %1100 = vsyncpa [#allocation5 + $0x1], 1 }
 0x3f6   :  { %1101 = vsyncpa [#allocation17], 1 }
 0x3f7   :  { %1103 = vsyncpa [#allocation17 + $0x1], 1 }
 0x3f8   :  { %1104 = vsyncpa [#allocation20], 1 }
 0x3f9   :  { %1106 = vsyncpa [#allocation20 + $0x1], 1 }

</bundles_post_ra>
